<compile_context>
chip_gen: v5e
topology: v5e:2x2
jax: 0.10.0
libtpu: 0.0.40
codegen_flags: <defaults>
</compile_context>

<pallas_src>
import functools

import jax
import jax.numpy as jnp
from jax.experimental import pallas as pl
from jax.experimental.pallas import tpu as pltpu


def edge_mlp_kernel(src_ref, edge_ref, w1_ref, w2_ref, b_ref, wo_ref, ln_ref,
                    o_ref, *, act_dtype):
    mm_dtype = w1_ref.dtype

    # ConcatFreeLinear: x1 @ W1 + x2 @ W2 + (b1 + b2).  Inputs are cast to the
    # matmul dtype per-tile in VMEM (no wrapper-side cast); f32 accumulation.
    h = (jnp.dot(src_ref[...].astype(mm_dtype), w1_ref[...],
                 preferred_element_type=jnp.float32)
         + jnp.dot(edge_ref[...].astype(mm_dtype), w2_ref[...],
                   preferred_element_type=jnp.float32)
         + b_ref[...])                                  # bias in f32

    # SiLU: bf16 on chips with a bf16 VPU/EUP path (v6e/v7x), f32 otherwise.
    ha = h.astype(act_dtype)
    s = ha * jax.nn.sigmoid(ha)

    # out Linear (MXU, f32 accumulation)
    o = jnp.dot(s.astype(wo_ref.dtype), wo_ref[...],
                preferred_element_type=jnp.float32)

    ln = ln_ref[...]                                    # (3, D_out) = [bo; gamma; beta]
    o = o + ln[0:1, :]

    # LayerNorm over last dim (biased variance, eps=1e-5), affine, f32 math.
    mean = jnp.mean(o, axis=-1, keepdims=True)
    diff = o - mean
    var = jnp.mean(diff * diff, axis=-1, keepdims=True)
    y = diff * jax.lax.rsqrt(var + 1e-5) * ln[1:2, :] + ln[2:3, :]

    o_ref[...] = y.astype(o_ref.dtype)


def _device_kind():
    try:
        return jax.devices()[0].device_kind.lower()
    except Exception:
        return ""


def _default_act_dtype(matmul_dtype):
    """bf16 SiLU only where the VPU/EUP have a bf16 path (v6e / v7x)."""
    if jnp.dtype(matmul_dtype) != jnp.dtype(jnp.bfloat16):
        return jnp.float32
    kind = _device_kind()
    if ("v6" in kind) or ("v7" in kind) or ("tpu7" in kind):
        return jnp.bfloat16
    return jnp.float32           # v5e / v4 / unknown: keep f32 vector math


def _two_tensorcores():
    kind = _device_kind()
    return ("v7" in kind) or ("tpu7" in kind)


def edge_mlp_forward(src, edge_attr, params, *, tm=2048,
                     matmul_dtype=jnp.bfloat16, act_dtype=None,
                     out_dtype=None):
    """src, edge_attr: [B, n_edges, D_in] -> [B, n_edges, out_dim]."""
    B, E, D_in = src.shape
    H = params["w1"].shape[1]
    D_out = params["wo"].shape[1]
    M = B * E
    out_dtype = src.dtype if out_dtype is None else out_dtype
    act_dtype = _default_act_dtype(matmul_dtype) if act_dtype is None else act_dtype

    # Inputs kept in their original dtype (reshape is layout-free); the cast to
    # the matmul dtype happens per-tile inside the kernel.
    x1 = src.reshape(M, D_in)
    x2 = edge_attr.reshape(M, D_in)
    w1 = params["w1"].astype(matmul_dtype)
    w2 = params["w2"].astype(matmul_dtype)
    b = (params["b1"] + params["b2"]).astype(jnp.float32)       # (1, H)
    wo = params["wo"].astype(matmul_dtype)
    ln = jnp.concatenate([params["bo"], params["gamma"], params["beta"]],
                         axis=0).astype(jnp.float32)            # (3, D_out)

    # --- tile selection: largest tile that fits the VMEM budget.  Only the
    #     2-TensorCore chip (v7x) wants >=2 grid steps, and never below 512. ---
    floor = 16                                  # >= bf16 native (16,128) sublane tile
    in_b = jnp.dtype(src.dtype).itemsize
    out_b = jnp.dtype(out_dtype).itemsize
    w_b = jnp.dtype(matmul_dtype).itemsize

    tm = max(floor, min(tm, pl.next_power_of_2(max(M, floor))))

    def tile_bytes(t):                          # double-buffered row tiles
        return 2 * (2 * t * D_in * in_b + t * D_out * out_b)

    tile_budget = 24 * 1024 * 1024
    while tm > floor and tile_bytes(tm) > tile_budget:
        tm //= 2
    if _two_tensorcores():
        while tm > 512 and pl.cdiv(M, tm) < 2:
            tm //= 2

    n_blocks = pl.cdiv(M, tm)    # ragged last block: OOB output rows are masked,
                                 # and every op is row-local, so no pad/slice needed.

    est = (tile_bytes(tm)
           + 2 * (2 * D_in * H + H * D_out) * w_b    # resident weights (dbl-buffered)
           + 2 * (H + 3 * D_out) * 4)                # bias + bo/gamma/beta
    vmem_limit = int(min(max(2 * est, 32 * 1024 * 1024), 60 * 1024 * 1024))

    out = pl.pallas_call(
        functools.partial(edge_mlp_kernel, act_dtype=act_dtype),
        out_shape=jax.ShapeDtypeStruct((M, D_out), out_dtype),
        grid_spec=pltpu.PrefetchScalarGridSpec(
            num_scalar_prefetch=0,
            grid=(n_blocks,),
            in_specs=[
                pl.BlockSpec((tm, D_in), lambda i: (i, 0)),    # src rows
                pl.BlockSpec((tm, D_in), lambda i: (i, 0)),    # edge rows
                pl.BlockSpec((D_in, H), lambda i: (0, 0)),     # W1
                pl.BlockSpec((D_in, H), lambda i: (0, 0)),     # W2
                pl.BlockSpec((1, H), lambda i: (0, 0)),        # b1 + b2
                pl.BlockSpec((H, D_out), lambda i: (0, 0)),    # Wo
                pl.BlockSpec((3, D_out), lambda i: (0, 0)),    # bo / gamma / beta
            ],
            out_specs=pl.BlockSpec((tm, D_out), lambda i: (i, 0)),
        ),
        compiler_params=pltpu.CompilerParams(
            dimension_semantics=("parallel",),
            vmem_limit_bytes=vmem_limit),
    )(x1, x2, w1, w2, b, wo, ln)

    return out.reshape(B, E, D_out)


def init_params(key, in_dim, hidden_dim, out_dim, dtype=jnp.float32):
    """Deterministic synthetic init (shapes match the PyTorch module).
    Weights stored transposed ([in, out]) relative to torch.nn.Linear."""
    k1, k2, k3, k4, k5, k6 = jax.random.split(key, 6)
    s1 = 1.0 / jnp.sqrt(in_dim)
    s2 = 1.0 / jnp.sqrt(hidden_dim)
    return {
        "w1": jax.random.uniform(k1, (in_dim, hidden_dim), dtype, -s1, s1),
        "b1": jax.random.uniform(k2, (1, hidden_dim), dtype, -s1, s1),
        "w2": jax.random.uniform(k3, (in_dim, hidden_dim), dtype, -s1, s1),
        "b2": jax.random.uniform(k4, (1, hidden_dim), dtype, -s1, s1),
        "wo": jax.random.uniform(k5, (hidden_dim, out_dim), dtype, -s2, s2),
        "bo": jax.random.uniform(k6, (1, out_dim), dtype, -s2, s2),
        "gamma": jnp.ones((1, out_dim), dtype),   # nn.LayerNorm default
        "beta": jnp.zeros((1, out_dim), dtype),
    }


def edge_mlp_ref(src, edge_attr, p, matmul_dtype=jnp.float32,
                 act_dtype=jnp.float32):
    """Pure-JAX reference (optionally with the same bf16 casts as the kernel)."""
    B, E, D = src.shape
    x1 = src.reshape(-1, D).astype(matmul_dtype)
    x2 = edge_attr.reshape(-1, D).astype(matmul_dtype)
    h = (jnp.dot(x1, p["w1"].astype(matmul_dtype),
                 preferred_element_type=jnp.float32)
         + jnp.dot(x2, p["w2"].astype(matmul_dtype),
                   preferred_element_type=jnp.float32)
         + p["b1"] + p["b2"])
    ha = h.astype(act_dtype)
    s = (ha * jax.nn.sigmoid(ha)).astype(matmul_dtype)
    o = jnp.dot(s, p["wo"].astype(matmul_dtype),
                preferred_element_type=jnp.float32) + p["bo"]
    mean = o.mean(-1, keepdims=True)
    var = ((o - mean) ** 2).mean(-1, keepdims=True)
    y = (o - mean) * jax.lax.rsqrt(var + 1e-5) * p["gamma"] + p["beta"]
    return y.reshape(B, E, -1)


if __name__ == "__main__":
    # EdgeMLP.forward: src / edge_attr are [B, n_edges, D_in]
    # (ConcatFreeLinear shares in_dim, i.e. edge_dim == in_src_node_dim).
    # H = D_out = 128 keeps the MXU output and the final store lane-dense;
    # E = 250 makes M = 500, exercising the masked ragged-tail path.
    B, E, D_IN, HID, D_OUT = 2, 250, 64, 128, 128

    key = jax.random.PRNGKey(0)
    kx, ke, kp = jax.random.split(key, 3)
    src = jax.random.normal(kx, (B, E, D_IN), jnp.float32)
    edge_attr = jax.random.normal(ke, (B, E, D_IN), jnp.float32)
    params = init_params(kp, D_IN, HID, D_OUT)

    # --- f32 matmul path, tm=256 forces a 2-step grid + ragged last block;
    #     tight check against the plain f32 reference ---
    out_f32 = jax.block_until_ready(
        edge_mlp_forward(src, edge_attr, params, tm=256,
                         matmul_dtype=jnp.float32))
    ref_f32 = edge_mlp_ref(src, edge_attr, params,
                           matmul_dtype=jnp.float32, act_dtype=jnp.float32)
    assert out_f32.shape == (B, E, D_OUT)
    assert jnp.allclose(out_f32, ref_f32, atol=1e-4, rtol=1e-4), \
        "f32 path mismatch vs reference"

    # --- bf16 matmul path with default tiling (single big tile); compared
    #     against a reference applying the same casts ---
    act = _default_act_dtype(jnp.bfloat16)
    out_bf16 = jax.block_until_ready(
        edge_mlp_forward(src, edge_attr, params, matmul_dtype=jnp.bfloat16))
    ref_bf16 = edge_mlp_ref(src, edge_attr, params,
                            matmul_dtype=jnp.bfloat16, act_dtype=act)
    assert out_bf16.shape == (B, E, D_OUT)
    assert jnp.allclose(out_bf16, ref_bf16, atol=3e-2, rtol=3e-2), \
        "bf16 path mismatch vs bf16 reference"

    print("KERNEL_OK")
</pallas_src>

<mosaic_0001>
module attributes {stable_mosaic.version = 11 : i64} {
  func.func @edge_mlp_kernel(%arg0: i32, %arg1: memref<256x64xf32, #tpu.memory_space<vmem>>, %arg2: memref<256x64xf32, #tpu.memory_space<vmem>>, %arg3: memref<64x128xf32, #tpu.memory_space<vmem>>, %arg4: memref<64x128xf32, #tpu.memory_space<vmem>>, %arg5: memref<1x128xf32, #tpu.memory_space<vmem>>, %arg6: memref<128x128xf32, #tpu.memory_space<vmem>>, %arg7: memref<3x128xf32, #tpu.memory_space<vmem>>, %arg8: memref<256x128xf32, #tpu.memory_space<vmem>>) attributes {dimension_semantics = [#tpu.dimension_semantics<parallel>], iteration_bounds = array<i64: 2>, scalar_prefetch = 0 : i64, scratch_operands = 0 : i64, tpu.core_type = #tpu.core_type<tc>, window_params = [{transform_indices = @transform_0, window_bounds = array<i64: 256, 64>}, {transform_indices = @transform_1, window_bounds = array<i64: 256, 64>}, {pipeline_mode = #tpu.pipeline_mode<synchronous>, transform_indices = @transform_2, window_bounds = array<i64: 64, 128>}, {pipeline_mode = #tpu.pipeline_mode<synchronous>, transform_indices = @transform_3, window_bounds = array<i64: 64, 128>}, {pipeline_mode = #tpu.pipeline_mode<synchronous>, transform_indices = @transform_4, window_bounds = array<i64: 1, 128>}, {pipeline_mode = #tpu.pipeline_mode<synchronous>, transform_indices = @transform_5, window_bounds = array<i64: 128, 128>}, {pipeline_mode = #tpu.pipeline_mode<synchronous>, transform_indices = @transform_6, window_bounds = array<i64: 3, 128>}, {transform_indices = @transform_7, window_bounds = array<i64: 256, 128>}]} {
    %c0 = arith.constant 0 : index
    %c0_0 = arith.constant 0 : index
    %0 = vector.load %arg1[%c0, %c0_0] : memref<256x64xf32, #tpu.memory_space<vmem>>, vector<256x64xf32>
    %c0_1 = arith.constant 0 : index
    %c0_2 = arith.constant 0 : index
    %1 = vector.load %arg3[%c0_1, %c0_2] : memref<64x128xf32, #tpu.memory_space<vmem>>, vector<64x128xf32>
    %cst = arith.constant dense<0.000000e+00> : vector<256x128xf32>
    %2 = tpu.matmul %0, %1, %cst {dimension_numbers = #tpu.dot_dimension_numbers<[1], [0], [0], [1], [0, 0, 1, 1], [], []>} : vector<256x64xf32>, vector<64x128xf32>, vector<256x128xf32> -> vector<256x128xf32>
    %c0_3 = arith.constant 0 : index
    %c0_4 = arith.constant 0 : index
    %3 = vector.load %arg2[%c0_3, %c0_4] : memref<256x64xf32, #tpu.memory_space<vmem>>, vector<256x64xf32>
    %c0_5 = arith.constant 0 : index
    %c0_6 = arith.constant 0 : index
    %4 = vector.load %arg4[%c0_5, %c0_6] : memref<64x128xf32, #tpu.memory_space<vmem>>, vector<64x128xf32>
    %cst_7 = arith.constant dense<0.000000e+00> : vector<256x128xf32>
    %5 = tpu.matmul %3, %4, %cst_7 {dimension_numbers = #tpu.dot_dimension_numbers<[1], [0], [0], [1], [0, 0, 1, 1], [], []>} : vector<256x64xf32>, vector<64x128xf32>, vector<256x128xf32> -> vector<256x128xf32>
    %6 = arith.addf %2, %5 : vector<256x128xf32>
    %c0_8 = arith.constant 0 : index
    %c0_9 = arith.constant 0 : index
    %7 = vector.load %arg5[%c0_8, %c0_9] : memref<1x128xf32, #tpu.memory_space<vmem>>, vector<1x128xf32>
    %8 = vector.broadcast %7 : vector<1x128xf32> to vector<256x128xf32>
    %9 = arith.addf %6, %8 : vector<256x128xf32>
    %10 = arith.negf %9 : vector<256x128xf32>
    %11 = math.exp %10 : vector<256x128xf32>
    %cst_10 = arith.constant 1.000000e+00 : f32
    %12 = vector.broadcast %cst_10 : f32 to vector<256x128xf32>
    %13 = arith.addf %12, %11 : vector<256x128xf32>
    %14 = arith.divf %12, %13 : vector<256x128xf32>
    %15 = arith.mulf %9, %14 : vector<256x128xf32>
    %c0_11 = arith.constant 0 : index
    %c0_12 = arith.constant 0 : index
    %16 = vector.load %arg6[%c0_11, %c0_12] : memref<128x128xf32, #tpu.memory_space<vmem>>, vector<128x128xf32>
    %cst_13 = arith.constant dense<0.000000e+00> : vector<256x128xf32>
    %17 = tpu.matmul %15, %16, %cst_13 {dimension_numbers = #tpu.dot_dimension_numbers<[1], [0], [0], [1], [0, 0, 1, 1], [], []>} : vector<256x128xf32>, vector<128x128xf32>, vector<256x128xf32> -> vector<256x128xf32>
    %c0_14 = arith.constant 0 : index
    %c0_15 = arith.constant 0 : index
    %18 = vector.load %arg7[%c0_14, %c0_15] : memref<3x128xf32, #tpu.memory_space<vmem>>, vector<3x128xf32>
    %19 = vector.extract_strided_slice %18 {offsets = [0, 0], sizes = [1, 128], strides = [1, 1]} : vector<3x128xf32> to vector<1x128xf32>
    %20 = vector.broadcast %19 : vector<1x128xf32> to vector<256x128xf32>
    %21 = arith.addf %17, %20 : vector<256x128xf32>
    %cst_16 = arith.constant dense<0.000000e+00> : vector<256xf32>
    %22 = vector.multi_reduction <add>, %21, %cst_16 [1] : vector<256x128xf32> to vector<256xf32>
    %23 = vector.shape_cast %22 : vector<256xf32> to vector<256x1xf32>
    %cst_17 = arith.constant 1.280000e+02 : f32
    %24 = vector.broadcast %cst_17 : f32 to vector<256x1xf32>
    %25 = arith.divf %23, %24 : vector<256x1xf32>
    %26 = vector.broadcast %25 : vector<256x1xf32> to vector<256x128xf32>
    %27 = arith.subf %21, %26 : vector<256x128xf32>
    %28 = arith.mulf %27, %27 : vector<256x128xf32>
    %cst_18 = arith.constant dense<0.000000e+00> : vector<256xf32>
    %29 = vector.multi_reduction <add>, %28, %cst_18 [1] : vector<256x128xf32> to vector<256xf32>
    %30 = vector.shape_cast %29 : vector<256xf32> to vector<256x1xf32>
    %cst_19 = arith.constant 1.280000e+02 : f32
    %31 = vector.broadcast %cst_19 : f32 to vector<256x1xf32>
    %32 = arith.divf %30, %31 : vector<256x1xf32>
    %cst_20 = arith.constant 9.99999974E-6 : f32
    %33 = vector.broadcast %cst_20 : f32 to vector<256x1xf32>
    %34 = arith.addf %32, %33 : vector<256x1xf32>
    %35 = math.rsqrt %34 : vector<256x1xf32>
    %36 = vector.broadcast %35 : vector<256x1xf32> to vector<256x128xf32>
    %37 = arith.mulf %27, %36 : vector<256x128xf32>
    %38 = vector.extract_strided_slice %18 {offsets = [1, 0], sizes = [1, 128], strides = [1, 1]} : vector<3x128xf32> to vector<1x128xf32>
    %39 = vector.broadcast %38 : vector<1x128xf32> to vector<256x128xf32>
    %40 = arith.mulf %37, %39 : vector<256x128xf32>
    %41 = vector.extract_strided_slice %18 {offsets = [2, 0], sizes = [1, 128], strides = [1, 1]} : vector<3x128xf32> to vector<1x128xf32>
    %42 = vector.broadcast %41 : vector<1x128xf32> to vector<256x128xf32>
    %43 = arith.addf %40, %42 : vector<256x128xf32>
    %c0_21 = arith.constant 0 : index
    %c0_22 = arith.constant 0 : index
    %44 = vector.load %arg8[%c0_21, %c0_22] : memref<256x128xf32, #tpu.memory_space<vmem>>, vector<256x128xf32>
    tpu.vector_store %arg8[%c0_21, %c0_22], %43 {strides = array<i32>} : memref<256x128xf32, #tpu.memory_space<vmem>>, vector<256x128xf32>,
    return
  }
  func.func @transform_0(%arg0: i32) -> (i32, i32) {
    %c0_i32 = arith.constant 0 : i32
    %c0_i32_0 = arith.constant 0 : i32
    return %arg0, %c0_i32 : i32, i32
  }
  func.func @transform_1(%arg0: i32) -> (i32, i32) {
    %c0_i32 = arith.constant 0 : i32
    %c0_i32_0 = arith.constant 0 : i32
    return %arg0, %c0_i32 : i32, i32
  }
  func.func @transform_2(%arg0: i32) -> (i32, i32) {
    %c0_i32 = arith.constant 0 : i32
    %c0_i32_0 = arith.constant 0 : i32
    %c0_i32_1 = arith.constant 0 : i32
    return %c0_i32, %c0_i32_0 : i32, i32
  }
  func.func @transform_3(%arg0: i32) -> (i32, i32) {
    %c0_i32 = arith.constant 0 : i32
    %c0_i32_0 = arith.constant 0 : i32
    %c0_i32_1 = arith.constant 0 : i32
    return %c0_i32, %c0_i32_0 : i32, i32
  }
  func.func @transform_4(%arg0: i32) -> (i32, i32) {
    %c0_i32 = arith.constant 0 : i32
    %c0_i32_0 = arith.constant 0 : i32
    %c0_i32_1 = arith.constant 0 : i32
    return %c0_i32, %c0_i32_0 : i32, i32
  }
  func.func @transform_5(%arg0: i32) -> (i32, i32) {
    %c0_i32 = arith.constant 0 : i32
    %c0_i32_0 = arith.constant 0 : i32
    %c0_i32_1 = arith.constant 0 : i32
    return %c0_i32, %c0_i32_0 : i32, i32
  }
  func.func @transform_6(%arg0: i32) -> (i32, i32) {
    %c0_i32 = arith.constant 0 : i32
    %c0_i32_0 = arith.constant 0 : i32
    %c0_i32_1 = arith.constant 0 : i32
    return %c0_i32, %c0_i32_0 : i32, i32
  }
  func.func @transform_7(%arg0: i32) -> (i32, i32) {
    %c0_i32 = arith.constant 0 : i32
    %c0_i32_0 = arith.constant 0 : i32
    return %arg0, %c0_i32 : i32, i32
  }
}

</mosaic_0001>

<bundles_post_ra>
// kernel: tpu_custom_call.1
= control target key start
LH: loop header
LB: loop body
LE: loop exit
PB: predicated region body
PF: predicated region fallthrough
CT: control target
= control target key end

     0   :  { %12 = vsyncpa [#allocation3], 0  ;;  %s4201_s0 = inlined_call_operand.vmem [shape: f32[500,64], index: 0, kind: input, shape index: {}]   ;;  %s4202_s1 = inlined_call_operand.vmem [shape: f32[500,64], index: 1, kind: input, shape index: {}]   ;;  %s4203_s2 = inlined_call_operand.vmem [shape: f32[64,128], index: 2, kind: input, shape index: {}]   ;;  %s4204_s3 = inlined_call_operand.vmem [shape: f32[64,128], index: 3, kind: input, shape index: {}]   ;;  %s4205_s4 = inlined_call_operand.vmem [shape: f32[1,128], index: 4, kind: input, shape index: {}]   ;;  %s4206_s5 = inlined_call_operand.vmem [shape: f32[128,128], index: 5, kind: input, shape index: {}]   ;;  %s4207_s6 = inlined_call_operand.vmem [shape: f32[3,128], index: 6, kind: input, shape index: {}]   ;;  %s4208_s7 = inlined_call_operand.hbm [shape: f32[500,128], index: 7, kind: output, shape index: {}]  }
   0x1   :  { %14 = vsyncpa [#allocation3 + $0x1], 0  ;;  %s2998_s24 = smov 0   ;;  %s3000_s25 = smov 0  }
   0x2   :  { %s3002_s26 = smov 0   ;;  %s3004_s27 = smov 0  }
   0x3 LB: > { %s3019_s28 = sadd.s32 4294967295, %s2952_s27   ;;  %s2494_s29 = sadd.s32 4294967294, %s2952_s27   ;;  %s2952_s27 = sphi %s3004_s27, %s4221_s27   ;;  %s2948_s26 = sphi %s3002_s26, %s4220_s26   ;;  %s2944_s25 = sphi %s3000_s25, %s4219_s25   ;;  %s2940_s24 = sphi %s2998_s24, %s4218_s24  }
   0x4   : > { %s3023_s30 = sadd.s32 1, %s2952_s27   ;;  %s184_s8 = sadd.s32 1, %s2948_s26 }
   0x5   : > { %s181_s9 = ssub.s32 %s2952_s27, %s3023_s30  ;;  %p194_p0 = scmp.ne.s32.totalorder %s2948_s26, %s2944_s25 }
   0x6   : > { %p182_p1 = scmp.eq.s32.totalorder %s181_s9, 0  ;;  %p195_p2 = scmp.eq.s32.totalorder %s3019_s28, 1 }
   0x7   : > { %p200_p3 = scmp.ne.s32.totalorder %s2944_s25, %s2940_s24  ;;  %p201_p4 = scmp.eq.s32.totalorder %s2494_s29, 1 }
   0x8   : > { %s3034_s10 = scalar_select %p182_p1, %s2948_s26, %s184_s8  }
   0x9   : > { %p3036_p5 = por %p195_p2, %p194_p0  ;;  %p3040_p6 = por %p201_p4, %p200_p3 }
   0xa   : > { %p2497_p7 = scmp.ge.s32.totalorder %s2952_s27, 1  ;;  %p268_p8 = scmp.lt.s32.totalorder %s2952_s27, 3 }
   0xc   : > { %p269_p9 = pnand %p2497_p7, %p268_p8 }
   0xd   : > { %s3056_s19 = sshll.u32 (!%p269_p9), %s3019_s28, 5 }
   0xe   : > { %272 = sbr.rel (%p269_p9) target bundleno = 877 (0x36d), region = 48  ;;  %p318_p10 = scmp.lt.s32.totalorder (!%p269_p9), %s3056_s19, 62 }
  0x13   : > { %v425_v0 = vld [vmem:[%s4204_s3 + $0x38] sm:$0xff]  ;;  %v424_v2 = vld [vmem:[%s4204_s3 + $0x30] sm:$0xff]  ;;  %v423_v4 = vld [vmem:[%s4204_s3 + $0x28] sm:$0xff]  ;;  %s319_s9 = scalar_select %p318_p10, %s3056_s19, 62  ;;  %vm426_vm0 = vcmask 523264  }
  0x14   : > { %v385_v1 = vld [vmem:[%s4203_s2 + $0x38] sm:$0xff]  ;;  %531 = vmatpush.msra.mxu0 %v425_v0  ;;  %v384_v3 = vld [vmem:[%s4203_s2 + $0x30] sm:$0xff]  ;;  %v383_v5 = vld [vmem:[%s4203_s2 + $0x28] sm:$0xff]  ;;  %2609 = vmatpush.msra.mxu3 %v425_v0  ;;  %s2406_s14 = ssub.s32 (%p3036_p5), 63, %s3056_s19 }
  0x15   : > { %740 = vmatpush.msra.mxu1 %v385_v1  ;;  %v422_v6 = vld [vmem:[%s4204_s3 + $0x20] sm:$0xff]  ;;  %v421_v8 = vld [vmem:[%s4204_s3 + $0x18] sm:$0xff]  ;;  %s2500_s22 = sshll.u32 %s319_s9, 3  ;;  %v420_v10 = vld [vmem:[%s4204_s3 + $0x10] sm:$0xff]  ;;  %s310_s9 = sand.u32 1, %s2944_s25  }
  0x16   : > { %532 = vmatpush.msra.mxu0 %v424_v2  ;;  %v382_v7 = vld [vmem:[%s4203_s2 + $0x20] sm:$0xff]  ;;  %2610 = vmatpush.msra.mxu3 %v424_v2  ;;  %v381_v9 = vld [vmem:[%s4203_s2 + $0x18] sm:$0xff]  ;;  %v380_v11 = vld [vmem:[%s4203_s2 + $0x10] sm:$0xff]  ;;  %s3096_s20 = scalar_lea.vmem %s4202_s1, %s2500_s22  ;;  %s3101_s29 = scalar_lea.vmem %s4201_s0, %s2500_s22 }
  0x17   : > { %741 = vmatpush.msra.mxu1 %v384_v3  ;;  %v419_v12 = vld [vmem:[%s4204_s3 + $0x8] sm:$0xff]  ;;  %v418_v14 = vld [vmem:[%s4204_s3] sm:$0xff]  ;;  %v388_v20 = vld [vmem:[%s3096_s20 + $0x10] sm:$0xff]  ;;  %s2498_s23 = sshll.u32 %s310_s9, 8  ;;  %s4140_s13 = scalar_lea.sflag [#allocation3], %s310_s9 }
  0x18   : > { %533 = vmatpush.msra.mxu0 %v423_v4  ;;  %2611 = vmatpush.msra.mxu3 %v423_v4  ;;  %v379_v13 = vld [vmem:[%s4203_s2 + $0x8] sm:$0xff]  ;;  %v378_v15 = vld [vmem:[%s4203_s2] sm:$0xff]  ;;  %v348_v21 = vld [vmem:[%s3101_s29 + $0x10] sm:$0xff]  ;;  %s3905_s8 = scalar_lea.vmem [#allocation2], %s2498_s23  ;;  %p2407_p11 = scmp.lt.s32.totalorder (%p3036_p5), %s2406_s14, 32 }
  0x19   : > { %742 = vmatpush.msra.mxu1 %v383_v5  ;;  %v386_v16 = vld [vmem:[%s3096_s20] sm:$0xff]  ;;  %v387_v18 = vld [vmem:[%s3096_s20 + $0x8] sm:$0xff]  ;;  %v389_v23 = vld [vmem:[%s3096_s20 + $0x18] sm:$0xff] }
  0x1a   : > { %534 = vmatpush.msra.mxu0 %v422_v6  ;;  %2612 = vmatpush.msra.mxu3 %v422_v6  ;;  %v346_v17 = vld [vmem:[%s3101_s29] sm:$0xff]  ;;  %v347_v19 = vld [vmem:[%s3101_s29 + $0x8] sm:$0xff]  ;;  %v349_v24 = vld [vmem:[%s3101_s29 + $0x18] sm:$0xff] }
  0x1b   : > { %743 = vmatpush.msra.mxu1 %v382_v7  ;;  %v411_v22 = vld [vmem:[%s3096_s20 + $0xc8] sm:$0xff]  ;;  %v412_v25 = vld [vmem:[%s3096_s20 + $0xd0] sm:$0xff]  ;;  %v390_v26 = vld [vmem:[%s3096_s20 + $0x20] sm:$0xff] }
  0x1c   : > { %535 = vmatpush.msra.mxu0 %v421_v8  ;;  %2613 = vmatpush.msra.mxu3 %v421_v8  ;;  %v350_v27 = vld [vmem:[%s3101_s29 + $0x20] sm:$0xff]  ;;  %v413_v28 = vld [vmem:[%s3096_s20 + $0xd8] sm:$0xff]  ;;  %v391_v29 = vld [vmem:[%s3096_s20 + $0x28] sm:$0xff] }
  0x1d   : > { %744 = vmatpush.msra.mxu1 %v381_v9  ;;  %v351_v30 = vld [vmem:[%s3101_s29 + $0x28] sm:$0xff]  ;;  %v414_v31 = vld [vmem:[%s3096_s20 + $0xe0] sm:$0xff]  ;;  %v392_v32 = vld [vmem:[%s3096_s20 + $0x30] sm:$0xff] }
  0x1e   : > { %536 = vmatpush.msra.mxu0 %v420_v10  ;;  %2614 = vmatpush.msra.mxu3 %v420_v10  ;;  %v352_v33 = vld [vmem:[%s3101_s29 + $0x30] sm:$0xff]  ;;  %v415_v34 = vld [vmem:[%s3096_s20 + $0xe8] sm:$0xff]  ;;  %v393_v35 = vld [vmem:[%s3096_s20 + $0x38] sm:$0xff] }
  0x1f   : > { %745 = vmatpush.msra.mxu1 %v380_v11  ;;  %v353_v36 = vld [vmem:[%s3101_s29 + $0x38] sm:$0xff]  ;;  %v416_v37 = vld [vmem:[%s3096_s20 + $0xf0] sm:$0xff]  ;;  %v394_v38 = vld [vmem:[%s3096_s20 + $0x40] sm:$0xff] }
  0x20   : > { %537 = vmatpush.msra.mxu0 %v419_v12  ;;  %2615 = vmatpush.msra.mxu3 %v419_v12  ;;  %v354_v39 = vld [vmem:[%s3101_s29 + $0x40] sm:$0xff]  ;;  %v417_v40 = vld [vmem:[%s3096_s20 + $0xf8] sm:$0xff]  ;;  %v395_v41 = vld [vmem:[%s3096_s20 + $0x48] sm:$0xff] }
  0x21   : > { %746 = vmatpush.msra.mxu1 %v379_v13  ;;  %v355_v42 = vld [vmem:[%s3101_s29 + $0x48] sm:$0xff]  ;;  %v396_v44 = vld [vmem:[%s3096_s20 + $0x50] sm:$0xff]  ;;  %v397_v47 = vld [vmem:[%s3096_s20 + $0x58] sm:$0xff] }
  0x22   : > { %538 = vmatpush.msra.mxu0 %v418_v14  ;;  %2616 = vmatpush.msra.mxu3 %v418_v14  ;;  %v371_v43 = vld [vmem:[%s3101_s29 + $0xc8] sm:$0xff]  ;;  %v356_v45 = vld [vmem:[%s3101_s29 + $0x50] sm:$0xff]  ;;  %v357_v48 = vld [vmem:[%s3101_s29 + $0x58] sm:$0xff] }
  0x23   : > { %747 = vmatpush.msra.mxu1 %v378_v15  ;;  %2503 = vmatmul.msk.f32.vlgmr.msra.gmra.mxu0 %vm426_vm0, %v386_v16  ;;  %v372_v46 = vld [vmem:[%s3101_s29 + $0xd0] sm:$0xff]  ;;  %v398_v49 = vld [vmem:[%s3096_s20 + $0x60] sm:$0xff]  ;;  %v373_v51 = vld [vmem:[%s3101_s29 + $0xd8] sm:$0xff] }
  0x24   : > { %2535 = vmatmul.msk.f32.vlgmr.msra.gmra.mxu1 %vm426_vm0, %v346_v17  ;;  %2617 = vmatpush.msrb.mxu3 %v385_v1  ;;  %v358_v50 = vld [vmem:[%s3101_s29 + $0x60] sm:$0xff]  ;;  %v1536_v52 = vld [vmem:[%s4206_s5 + $0x78] sm:$0xff]  ;;  %v1535_v53 = vld [vmem:[%s4206_s5 + $0x70] sm:$0xff] }
  0x25   : > { %2528 = vmatmul.msk.f32.vlgmr.msra.gmra.mxu3 %vm426_vm0, %v411_v22  ;;  %1539 = vmatpush.msra.mxu2 %v1536_v52  ;;  %v1534_v54 = vld [vmem:[%s4206_s5 + $0x68] sm:$0xff]  ;;  %v374_v57 = vld [vmem:[%s3101_s29 + $0xe0] sm:$0xff]  ;;  %v1532_v59 = vld [vmem:[%s4206_s5 + $0x58] sm:$0xff] }
  0x26   : > { %2618 = vmatpush.msrb.mxu3 %v384_v3  ;;  %v399_v55 = vld [vmem:[%s3096_s20 + $0x68] sm:$0xff]  ;;  %v1533_v58 = vld [vmem:[%s4206_s5 + $0x60] sm:$0xff]  ;;  %v1531_v60 = vld [vmem:[%s4206_s5 + $0x50] sm:$0xff] }
  0x27   : > { %1540 = vmatpush.msra.mxu2 %v1535_v53  ;;  %v359_v56 = vld [vmem:[%s3101_s29 + $0x68] sm:$0xff]  ;;  %v400_v62 = vld [vmem:[%s3096_s20 + $0x70] sm:$0xff]  ;;  %v1529_v1 = vld [vmem:[%s4206_s5 + $0x40] sm:$0xff] }
  0x28   : > { %2619 = vmatpush.msrb.mxu3 %v383_v5  ;;  %v1530_v61 = vld [vmem:[%s4206_s5 + $0x48] sm:$0xff]  ;;  %v360_v63 = vld [vmem:[%s3101_s29 + $0x70] sm:$0xff]  ;;  %v1528_v2 = vld [vmem:[%s4206_s5 + $0x38] sm:$0xff] }
  0x29   : > { %1541 = vmatpush.msra.mxu2 %v1534_v54  ;;  %v375_v0 = vld [vmem:[%s3101_s29 + $0xe8] sm:$0xff]  ;;  %v1527_v3 = vld [vmem:[%s4206_s5 + $0x30] sm:$0xff]  ;;  %v401_v5 = vld [vmem:[%s3096_s20 + $0x78] sm:$0xff] }
  0x2a   : > { %2620 = vmatpush.msrb.mxu3 %v382_v7  ;;  %v1526_v4 = vld [vmem:[%s4206_s5 + $0x28] sm:$0xff]  ;;  %v361_v6 = vld [vmem:[%s3101_s29 + $0x78] sm:$0xff]  ;;  %v376_v7 = vld [vmem:[%s3101_s29 + $0xf0] sm:$0xff] }
  0x2b   : > { %2504 = vmatmul.msk.f32.gmra.mxu0 %vm426_vm0, %v387_v18  ;;  %1542 = vmatpush.msra.mxu2 %v1533_v58  ;;  %v1525_v8 = vld [vmem:[%s4206_s5 + $0x20] sm:$0xff]  ;;  %v1523_v10 = vld [vmem:[%s4206_s5 + $0x10] sm:$0xff]  ;;  %v1522_v12 = vld [vmem:[%s4206_s5 + $0x8] sm:$0xff] }
  0x2c   : > { %2536 = vmatmul.msk.f32.gmra.mxu1 %vm426_vm0, %v347_v19  ;;  %2621 = vmatpush.msrb.mxu3 %v381_v9  ;;  %v1524_v9 = vld [vmem:[%s4206_s5 + $0x18] sm:$0xff]  ;;  %v362_v16 = vld [vmem:[%s3101_s29 + $0x80] sm:$0xff] }
  0x2d   : > { %2529 = vmatmul.msk.f32.gmra.mxu3 %vm426_vm0, %v412_v25  ;;  %1543 = vmatpush.msra.mxu2 %v1532_v59  ;;  %v377_v17 = vld [vmem:[%s3101_s29 + $0xf8] sm:$0xff]  ;;  %v1521_v19 = vld [vmem:[%s4206_s5] sm:$0xff]  ;;  %v363_v25 = vld [vmem:[%s3101_s29 + $0x88] sm:$0xff] }
  0x2e   : > { %2622 = vmatpush.msrb.mxu3 %v380_v11  ;;  %v3244_v11 = vld [vmem:[%s4205_s4] ss:$0 sm:$0xff] }
  0x2f   : > { %1544 = vmatpush.msra.mxu2 %v1531_v60 }
  0x30   : > { %2623 = vmatpush.msrb.mxu3 %v379_v13 }
  0x31   : > { %1545 = vmatpush.msra.mxu2 %v1530_v61 }
  0x32   : > { %2624 = vmatpush.msrb.mxu3 %v378_v15  ;;  %v402_v15 = vld [vmem:[%s3096_s20 + $0x80] sm:$0xff] }
  0x33   : > { %2505 = vmatmul.msk.f32.gmra.mxu0 %vm426_vm0, %v388_v20  ;;  %1546 = vmatpush.msra.mxu2 %v1529_v1 }
  0x34   : > { %2537 = vmatmul.msk.f32.gmra.mxu1 %vm426_vm0, %v348_v21  ;;  %2625 = vmatpush.msra.mxu3 %v1536_v52 }
  0x35   : > { %2530 = vmatmul.msk.f32.gmra.mxu3 %vm426_vm0, %v413_v28  ;;  %1547 = vmatpush.msra.mxu2 %v1528_v2 }
  0x36   : > { %2626 = vmatpush.msra.mxu3 %v1535_v53 }
  0x37   : > { %1548 = vmatpush.msra.mxu2 %v1527_v3 }
  0x38   : > { %2627 = vmatpush.msra.mxu3 %v1534_v54 }
  0x39   : > { %1549 = vmatpush.msra.mxu2 %v1526_v4 }
  0x3a   : > { %2628 = vmatpush.msra.mxu3 %v1533_v58 }
  0x3b   : > { %2506 = vmatmul.msk.f32.gmra.mxu0 %vm426_vm0, %v389_v23  ;;  %1550 = vmatpush.msra.mxu2 %v1525_v8 }
  0x3c   : > { %2538 = vmatmul.msk.f32.gmra.mxu1 %vm426_vm0, %v349_v24  ;;  %2629 = vmatpush.msra.mxu3 %v1532_v59  ;;  %v403_v24 = vld [vmem:[%s3096_s20 + $0x88] sm:$0xff] }
  0x3d   : > { %2531 = vmatmul.msk.f32.gmra.mxu3 %vm426_vm0, %v414_v31  ;;  %1551 = vmatpush.msra.mxu2 %v1524_v9 }
  0x3e   : > { %2630 = vmatpush.msra.mxu3 %v1531_v60 }
  0x3f   : > { %1552 = vmatpush.msra.mxu2 %v1523_v10 }
  0x40   : > { %2631 = vmatpush.msra.mxu3 %v1530_v61 }
  0x41   : > { %1553 = vmatpush.msra.mxu2 %v1522_v12 }
  0x42   : > { %2632 = vmatpush.msra.mxu3 %v1529_v1 }
  0x43   : > { %2507 = vmatmul.msk.f32.gmra.mxu0 %vm426_vm0, %v390_v26  ;;  %1554 = vmatpush.msra.mxu2 %v1521_v19 }
  0x44   : > { %2539 = vmatmul.msk.f32.gmra.mxu1 %vm426_vm0, %v350_v27  ;;  %2633 = vmatpush.msra.mxu3 %v1528_v2 }
  0x45   : > { %2532 = vmatmul.msk.f32.gmra.mxu3 %vm426_vm0, %v415_v34  ;;  %v364_v34 = vld [vmem:[%s3101_s29 + $0x90] sm:$0xff] }
  0x46   : > { %2634 = vmatpush.msra.mxu3 %v1527_v3 }
  0x48   : > { %2635 = vmatpush.msra.mxu3 %v1526_v4 }
  0x4a   : > { %2636 = vmatpush.msra.mxu3 %v1525_v8 }
  0x4b   : > { %2508 = vmatmul.msk.f32.gmra.mxu0 %vm426_vm0, %v391_v29 }
  0x4c   : > { %2540 = vmatmul.msk.f32.gmra.mxu1 %vm426_vm0, %v351_v30  ;;  %2637 = vmatpush.msra.mxu3 %v1524_v9 }
  0x4d   : > { %2533 = vmatmul.msk.f32.gmra.mxu3 %vm426_vm0, %v416_v37 }
  0x4e   : > { %2638 = vmatpush.msra.mxu3 %v1523_v10 }
  0x50   : > { %2639 = vmatpush.msra.mxu3 %v1522_v12 }
  0x52   : > { %2640 = vmatpush.msra.mxu3 %v1521_v19  ;;  %v407_v19 = vld [vmem:[%s3096_s20 + $0xa8] sm:$0xff] }
  0x53   : > { %2509 = vmatmul.msk.f32.gmra.mxu0 %vm426_vm0, %v392_v32 }
  0x54   : > { %2541 = vmatmul.msk.f32.gmra.mxu1 %vm426_vm0, %v352_v33  ;;  %v404_v33 = vld [vmem:[%s3096_s20 + $0x90] sm:$0xff] }
  0x55   : > { %2534 = vmatmul.msk.f32.gmra.mxu3 %vm426_vm0, %v417_v40 }
  0x5b   : > { %2510 = vmatmul.msk.f32.gmra.mxu0 %vm426_vm0, %v393_v35 }
  0x5c   : > { %2542 = vmatmul.msk.f32.gmra.mxu1 %vm426_vm0, %v353_v36 }
  0x5d   : > { %2560 = vmatmul.msk.f32.vlgmr.msrb.gmra.mxu3 %vm426_vm0, %v371_v43 }
  0x63   : > { %2511 = vmatmul.msk.f32.gmra.mxu0 %vm426_vm0, %v394_v38 }
  0x64   : > { %2543 = vmatmul.msk.f32.gmra.mxu1 %vm426_vm0, %v354_v39 }
  0x65   : > { %2561 = vmatmul.msk.f32.gmra.mxu3 %vm426_vm0, %v372_v46 }
  0x6b   : > { %2512 = vmatmul.msk.f32.gmra.mxu0 %vm426_vm0, %v395_v41 }
  0x6c   : > { %2544 = vmatmul.msk.f32.gmra.mxu1 %vm426_vm0, %v355_v42 }
  0x6d   : > { %2562 = vmatmul.msk.f32.gmra.mxu3 %vm426_vm0, %v373_v51 }
  0x73   : > { %2513 = vmatmul.msk.f32.gmra.mxu0 %vm426_vm0, %v396_v44  ;;  %v405_v44 = vld [vmem:[%s3096_s20 + $0x98] sm:$0xff] }
  0x74   : > { %2545 = vmatmul.msk.f32.gmra.mxu1 %vm426_vm0, %v356_v45  ;;  %v365_v45 = vld [vmem:[%s3101_s29 + $0x98] sm:$0xff] }
  0x75   : > { %2563 = vmatmul.msk.f32.gmra.mxu3 %vm426_vm0, %v374_v57 }
  0x7b   : > { %2514 = vmatmul.msk.f32.gmra.mxu0 %vm426_vm0, %v397_v47 }
  0x7c   : > { %2546 = vmatmul.msk.f32.gmra.mxu1 %vm426_vm0, %v357_v48 }
  0x7d   : > { %2564 = vmatmul.msk.f32.gmra.mxu3 %vm426_vm0, %v375_v0 }
  0x83   : > { %2515 = vmatmul.msk.f32.gmra.mxu0 %vm426_vm0, %v398_v49 }
  0x84   : > { %2547 = vmatmul.msk.f32.gmra.mxu1 %vm426_vm0, %v358_v50 }
  0x85   : > { %2565 = vmatmul.msk.f32.gmra.mxu3 %vm426_vm0, %v376_v7 }
  0x8b   : > { %2516 = vmatmul.msk.f32.gmra.mxu0 %vm426_vm0, %v399_v55 }
  0x8c   : > { %2548 = vmatmul.msk.f32.gmra.mxu1 %vm426_vm0, %v359_v56 }
  0x8d   : > { %2566 = vmatmul.msk.f32.gmra.mxu3 %vm426_vm0, %v377_v17 }
  0x93   : > { %2517 = vmatmul.msk.f32.gmra.mxu0 %vm426_vm0, %v400_v62  ;;  %v406_v62 = vld [vmem:[%s3096_s20 + $0xa0] sm:$0xff] }
  0x94   : > { %2549 = vmatmul.msk.f32.gmra.mxu1 %vm426_vm0, %v360_v63  ;;  %v366_v63 = vld [vmem:[%s3101_s29 + $0xa0] sm:$0xff] }
  0x9b   : > { %2518 = vmatmul.msk.f32.gmra.mxu0 %vm426_vm0, %v401_v5 }
  0x9c   : > { %2550 = vmatmul.msk.f32.gmra.mxu1 %vm426_vm0, %v361_v6 }
  0xa0   : > { %v540_v13 = vpop.f32.mrf.mxu0 }
  0xa1   : > { %v749_v14 = vpop.f32.mrf.mxu1 }
  0xa2   : > { %v750_v18 = vadd.f32 %v749_v14, %v540_v13 }
  0xa3   : > { %2519 = vmatmul.msk.f32.gmra.mxu0 %vm426_vm0, %v402_v15 }
  0xa4   : > { %2551 = vmatmul.msk.f32.gmra.mxu1 %vm426_vm0, %v362_v16  ;;  %v3259_v20 = vadd.f32 %v3244_v11, %v750_v18 }
  0xa6   : > { %v2567_v21 = vmul.f32 -1.442695, %v3259_v20 }
  0xa8   : > { %2683 = vpow2.f32 %v2567_v21  ;;  %v543_v22 = vpop.f32.mrf.mxu0 }
  0xa9   : > { %v752_v23 = vpop.f32.mrf.mxu1 }
  0xaa   : > { %v753_v26 = vadd.f32 %v752_v23, %v543_v22 }
  0xab   : > { %2520 = vmatmul.msk.f32.gmra.mxu0 %vm426_vm0, %v403_v24 }
  0xac   : > { %v3265_v27 = vadd.f32 %v3244_v11, %v753_v26  ;;  %2552 = vmatmul.msk.f32.gmra.mxu1 %vm426_vm0, %v363_v25 }
  0xae   : > { %v2684_v28 = vpop.eup %2683  ;;  %v2568_v29 = vmul.f32 -1.442695, %v3265_v27 }
  0xaf   : > { %v977_v30 = vadd.f32 1.0, %v2684_v28 }
  0xb0   : > { %2685 = vpow2.f32 %v2568_v29  ;;  %v546_v31 = vpop.f32.mrf.mxu0 }
  0xb1   : > { %v755_v32 = vpop.f32.mrf.mxu1  ;;  %2687 = vrcp.f32 %v977_v30  ;;  %v1020_v48 = vand.u32 2147483648, %v977_v30  ;;  %v1018_v51 = vand.u32 2147483647, %v977_v30  ;;  %vm1014_vm2 = vweird.f32 %v977_v30 }
  0xb2   : > { %v756_v35 = vadd.f32 %v755_v32, %v546_v31 }
  0xb3   : > { %2521 = vmatmul.msk.f32.gmra.mxu0 %vm426_vm0, %v404_v33  ;;  %v1021_v57 = vor.u32 1.1754944e-38, %v1020_v48  ;;  %vm1019_vm4 = vcmp.eq.f32.partialorder %v1018_v51, 8.507059e+37 }
  0xb4   : > { %v3273_v36 = vadd.f32 %v3244_v11, %v756_v35  ;;  %2553 = vmatmul.msk.f32.gmra.mxu1 %vm426_vm0, %v364_v34 }
  0xb6   : > { %v2686_v37 = vpop.eup %2685  ;;  %v2569_v38 = vmul.f32 -1.442695, %v3273_v36 }
  0xb7   : > { %v2688_v39 = vpop.eup %2687  ;;  %v978_v40 = vadd.f32 1.0, %v2686_v37 }
  0xb8   : > { %2689 = vpow2.f32 %v2569_v38  ;;  %v1010_v41 = vmul.f32 %v2688_v39, %v977_v30  ;;  %v549_v42 = vpop.f32.mrf.mxu0  ;;  %vm1015_vm1 = vweird.f32 %v2688_v39 }
  0xb9   : > { %2691 = vrcp.f32 %v978_v40  ;;  %v758_v43 = vpop.f32.mrf.mxu1  ;;  %vm1016_vm3 = vmor %vm1014_vm2, %vm1015_vm1  ;;  %v1035_v4 = vand.u32 2147483648, %v978_v40  ;;  %v1033_v7 = vand.u32 2147483647, %v978_v40  ;;  %vm1029_vm6 = vweird.f32 %v978_v40 }
  0xba   : > { %v759_v46 = vadd.f32 %v758_v43, %v549_v42  ;;  %v1011_v47 = vsub.f32 1.0, %v1010_v41  ;;  %v368_v41 = vld [vmem:[%s3101_s29 + $0xb0] sm:$0xff] }
  0xbb   : > { %2522 = vmatmul.msk.f32.gmra.mxu0 %vm426_vm0, %v405_v44  ;;  %v1036_v14 = vor.u32 1.1754944e-38, %v1035_v4  ;;  %vm1034_vm8 = vcmp.eq.f32.partialorder %v1033_v7, 8.507059e+37 }
  0xbc   : > { %v3281_v49 = vadd.f32 %v3244_v11, %v759_v46  ;;  %2554 = vmatmul.msk.f32.gmra.mxu1 %vm426_vm0, %v365_v45  ;;  %v1012_v50 = vmul.f32 %v2688_v39, %v1011_v47 }
  0xbe   : > { %v2690_v52 = vpop.eup %2689  ;;  %v2570_v53 = vmul.f32 -1.442695, %v3281_v49  ;;  %v1013_v54 = vadd.f32 %v2688_v39, %v1012_v50 }
  0xbf   : > { %v2692_v55 = vpop.eup %2691  ;;  %v3286_v56 = vadd.f32 1.0, %v2690_v52 }
  0xc0   : > { %2693 = vpow2.f32 %v2570_v53  ;;  %v1017_v58 = vsel %vm1016_vm3, %v2688_v39, %v1013_v54  ;;  %v1025_v59 = vmul.f32 %v2692_v55, %v978_v40  ;;  %v552_v60 = vpop.f32.mrf.mxu0  ;;  %vm1030_vm5 = vweird.f32 %v2692_v55  ;;  %v408_v40 = vld [vmem:[%s3096_s20 + $0xb0] sm:$0xff] }
  0xc1   : > { %2695 = vrcp.f32 %v3286_v56  ;;  %v761_v61 = vpop.f32.mrf.mxu1  ;;  %v1022_v0 = vsel %vm1019_vm4, %v1021_v57, %v1017_v58  ;;  %vm1031_vm7 = vmor %vm1029_vm6, %vm1030_vm5  ;;  %v1050_v25 = vand.u32 2147483648, %v3286_v56  ;;  %v1048_v29 = vand.u32 2147483647, %v3286_v56 }
  0xc2   : > { %v762_v1 = vadd.f32 %v761_v61, %v552_v60  ;;  %v1489_v2 = vmul.f32 %v1022_v0, %v3259_v20  ;;  %v1026_v3 = vsub.f32 1.0, %v1025_v59  ;;  %v367_v20 = vld [vmem:[%s3101_s29 + $0xa8] sm:$0xff]  ;;  %vm1044_vm10 = vweird.f32 %v3286_v56  ;;  %v409_v60 = vld [vmem:[%s3096_s20 + $0xb8] sm:$0xff] }
  0xc3   : > { %2523 = vmatmul.msk.f32.gmra.mxu0 %vm426_vm0, %v406_v62  ;;  %v1051_v34 = vor.u32 1.1754944e-38, %v1050_v25  ;;  %vm1049_vm12 = vcmp.eq.f32.partialorder %v1048_v29, 8.507059e+37  ;;  %v369_v61 = vld [vmem:[%s3101_s29 + $0xb8] sm:$0xff] }
  0xc4   : > { %v3293_v5 = vadd.f32 %v3244_v11, %v762_v1  ;;  %2555 = vmatmul.msk.f32.gmra.mxu1 %vm426_vm0, %v366_v63  ;;  %v1027_v6 = vmul.f32 %v2692_v55, %v1026_v3  ;;  %1555 = vmatmul.f32.vlgmr.msra.gmra.mxu2 %v1489_v2 }
  0xc6   : > { %v2694_v8 = vpop.eup %2693  ;;  %v2571_v9 = vmul.f32 -1.442695, %v3293_v5  ;;  %v1028_v10 = vadd.f32 %v2692_v55, %v1027_v6 }
  0xc7   : > { %v2696_v12 = vpop.eup %2695  ;;  %v3298_v13 = vadd.f32 1.0, %v2694_v8 }
  0xc8   : > { %2697 = vpow2.f32 %v2571_v9  ;;  %v1032_v15 = vsel %vm1031_vm7, %v2692_v55, %v1028_v10  ;;  %v1040_v16 = vmul.f32 %v2696_v12, %v3286_v56  ;;  %v555_v17 = vpop.f32.mrf.mxu0  ;;  %vm1045_vm9 = vweird.f32 %v2696_v12 }
  0xc9   : > { %2699 = vrcp.f32 %v3298_v13  ;;  %v764_v18 = vpop.f32.mrf.mxu1  ;;  %v1037_v21 = vsel %vm1034_vm8, %v1036_v14, %v1032_v15  ;;  %vm1046_vm11 = vmor %vm1044_vm10, %vm1045_vm9  ;;  %v1065_v46 = vand.u32 2147483648, %v3298_v13  ;;  %v1063_v50 = vand.u32 2147483647, %v3298_v13 }
  0xca   : > { %v765_v22 = vadd.f32 %v764_v18, %v555_v17  ;;  %v1490_v23 = vmul.f32 %v1037_v21, %v3265_v27  ;;  %v1041_v24 = vsub.f32 1.0, %v1040_v16  ;;  %vm1059_vm14 = vweird.f32 %v3298_v13  ;;  %v410_v17 = vld [vmem:[%s3096_s20 + $0xc0] sm:$0xff] }
  0xcb   : > { %2524 = vmatmul.msk.f32.gmra.mxu0 %vm426_vm0, %v407_v19  ;;  %v1066_v55 = vor.u32 1.1754944e-38, %v1065_v46  ;;  %vm1064_vm1 = vcmp.eq.f32.partialorder %v1063_v50, 8.507059e+37  ;;  %v370_v18 = vld [vmem:[%s3101_s29 + $0xc0] sm:$0xff] }
  0xcc   : > { %v3307_v26 = vadd.f32 %v3244_v11, %v765_v22  ;;  %2556 = vmatmul.msk.f32.gmra.mxu1 %vm426_vm0, %v367_v20  ;;  %v1042_v28 = vmul.f32 %v2696_v12, %v1041_v24  ;;  %1558 = vmatmul.f32.gmra.mxu2 %v1490_v23 }
  0xce   : > { %v2698_v30 = vpop.eup %2697  ;;  %v2572_v27 = vmul.f32 -1.442695, %v3307_v26  ;;  %v1043_v31 = vadd.f32 %v2696_v12, %v1042_v28 }
  0xcf   : > { %v2700_v32 = vpop.eup %2699  ;;  %v3314_v33 = vadd.f32 1.0, %v2698_v30 }
  0xd0   : > { %2701 = vpow2.f32 %v2572_v27  ;;  %v1047_v35 = vsel %vm1046_vm11, %v2696_v12, %v1043_v31  ;;  %v1055_v37 = vmul.f32 %v2700_v32, %v3298_v13  ;;  %v558_v38 = vpop.f32.mrf.mxu0  ;;  %vm1060_vm13 = vweird.f32 %v2700_v32 }
  0xd1   : > { %2703 = vrcp.f32 %v3314_v33  ;;  %v767_v39 = vpop.f32.mrf.mxu1  ;;  %v1052_v42 = vsel %vm1049_vm12, %v1051_v34, %v1047_v35  ;;  %vm1061_vm15 = vmor %vm1059_vm14, %vm1060_vm13  ;;  %v1080_v2 = vand.u32 2147483648, %v3314_v33  ;;  %v1078_v6 = vand.u32 2147483647, %v3314_v33 }
  0xd2   : > { %v768_v43 = vadd.f32 %v767_v39, %v558_v38  ;;  %v1491_v44 = vmul.f32 %v1052_v42, %v3273_v36  ;;  %v1056_v45 = vsub.f32 1.0, %v1055_v37  ;;  %vm1074_vm3 = vweird.f32 %v3314_v33 }
  0xd3   : > { %2525 = vmatmul.msk.f32.gmra.mxu0 %vm426_vm0, %v408_v40  ;;  %v1081_v12 = vor.u32 1.1754944e-38, %v1080_v2  ;;  %vm1079_vm5 = vcmp.eq.f32.partialorder %v1078_v6, 8.507059e+37 }
  0xd4   : > { %v3323_v47 = vadd.f32 %v3244_v11, %v768_v43  ;;  %2557 = vmatmul.msk.f32.gmra.mxu1 %vm426_vm0, %v368_v41  ;;  %v1057_v48 = vmul.f32 %v2700_v32, %v1056_v45  ;;  %1561 = vmatmul.f32.gmra.mxu2 %v1491_v44 }
  0xd6   : > { %v2702_v51 = vpop.eup %2701  ;;  %v2573_v36 = vmul.f32 -1.442695, %v3323_v47  ;;  %v1058_v52 = vadd.f32 %v2700_v32, %v1057_v48 }
  0xd7   : > { %v2704_v53 = vpop.eup %2703  ;;  %v3330_v54 = vadd.f32 1.0, %v2702_v51 }
  0xd8   : > { %2705 = vpow2.f32 %v2573_v36  ;;  %v1062_v56 = vsel %vm1061_vm15, %v2700_v32, %v1058_v52  ;;  %v1070_v57 = vmul.f32 %v2704_v53, %v3314_v33  ;;  %v561_v58 = vpop.f32.mrf.mxu0  ;;  %vm1075_vm2 = vweird.f32 %v2704_v53 }
  0xd9   : > { %2707 = vrcp.f32 %v3330_v54  ;;  %v770_v59 = vpop.f32.mrf.mxu1  ;;  %v1067_v62 = vsel %vm1064_vm1, %v1066_v55, %v1062_v56  ;;  %vm1076_vm4 = vmor %vm1074_vm3, %vm1075_vm2  ;;  %v1095_v23 = vand.u32 2147483648, %v3330_v54  ;;  %v1093_v28 = vand.u32 2147483647, %v3330_v54 }
  0xda   : > { %v771_v63 = vadd.f32 %v770_v59, %v561_v58  ;;  %v1492_v0 = vmul.f32 %v1067_v62, %v3281_v49  ;;  %v1071_v1 = vsub.f32 1.0, %v1070_v57  ;;  %vm1089_vm7 = vweird.f32 %v3330_v54 }
  0xdb   : > { %2526 = vmatmul.msk.f32.gmra.mxu0 %vm426_vm0, %v409_v60  ;;  %v1096_v32 = vor.u32 1.1754944e-38, %v1095_v23  ;;  %vm1094_vm9 = vcmp.eq.f32.partialorder %v1093_v28, 8.507059e+37 }
  0xdc   : > { %v3339_v3 = vadd.f32 %v3244_v11, %v771_v63  ;;  %2558 = vmatmul.msk.f32.gmra.mxu1 %vm426_vm0, %v369_v61  ;;  %v1072_v4 = vmul.f32 %v2704_v53, %v1071_v1  ;;  %1564 = vmatmul.f32.gmra.mxu2 %v1492_v0 }
  0xde   : > { %v2706_v7 = vpop.eup %2705  ;;  %v2574_v49 = vmul.f32 -1.442695, %v3339_v3  ;;  %v1073_v8 = vadd.f32 %v2704_v53, %v1072_v4 }
  0xdf   : > { %v2708_v9 = vpop.eup %2707  ;;  %v983_v10 = vadd.f32 1.0, %v2706_v7 }
  0xe0   : > { %2709 = vpow2.f32 %v2574_v49  ;;  %v1077_v13 = vsel %vm1076_vm4, %v2704_v53, %v1073_v8  ;;  %v1085_v14 = vmul.f32 %v2708_v9, %v3330_v54  ;;  %v564_v15 = vpop.f32.mrf.mxu0  ;;  %vm1090_vm6 = vweird.f32 %v2708_v9 }
  0xe1   : > { %2711 = vrcp.f32 %v983_v10  ;;  %v773_v16 = vpop.f32.mrf.mxu1  ;;  %v1082_v19 = vsel %vm1079_vm5, %v1081_v12, %v1077_v13  ;;  %vm1091_vm8 = vmor %vm1089_vm7, %vm1090_vm6  ;;  %v1110_v42 = vand.u32 2147483648, %v983_v10  ;;  %v1108_v45 = vand.u32 2147483647, %v983_v10 }
  0xe2   : > { %v774_v20 = vadd.f32 %v773_v16, %v564_v15  ;;  %v1493_v21 = vmul.f32 %v1082_v19, %v3293_v5  ;;  %v1086_v22 = vsub.f32 1.0, %v1085_v14  ;;  %vm1104_vm10 = vweird.f32 %v983_v10  ;;  %v3370_v16 = vpop.f32.mrf.mxu3 }
  0xe3   : > { %2527 = vmatmul.msk.f32.gmra.mxu0 %vm426_vm0, %v410_v17  ;;  %v1111_v52 = vor.u32 1.1754944e-38, %v1110_v42  ;;  %vm1109_vm12 = vcmp.eq.f32.partialorder %v1108_v45, 8.507059e+37 }
  0xe4   : > { %v3352_v24 = vadd.f32 %v3244_v11, %v774_v20  ;;  %2559 = vmatmul.msk.f32.gmra.mxu1 %vm426_vm0, %v370_v18  ;;  %v1087_v25 = vmul.f32 %v2708_v9, %v1086_v22  ;;  %1567 = vmatmul.f32.gmra.mxu2 %v1493_v21 }
  0xe6   : > { %v2710_v29 = vpop.eup %2709  ;;  %v2575_v30 = vmul.f32 -1.442695, %v3352_v24  ;;  %v1088_v27 = vadd.f32 %v2708_v9, %v1087_v25 }
  0xe7   : > { %v2712_v5 = vpop.eup %2711  ;;  %v984_v31 = vadd.f32 1.0, %v2710_v29 }
  0xe8   : > { %2713 = vpow2.f32 %v2575_v30  ;;  %v1092_v33 = vsel %vm1091_vm8, %v2708_v9, %v1088_v27  ;;  %v1100_v34 = vmul.f32 %v2712_v5, %v983_v10  ;;  %v567_v35 = vpop.f32.mrf.mxu0  ;;  %vm1105_vm0 = vweird.f32 %v2712_v5 }
  0xe9   : > { %2715 = vrcp.f32 %v984_v31  ;;  %v776_v37 = vpop.f32.mrf.mxu1  ;;  %v1097_v38 = vsel %vm1094_vm9, %v1096_v32, %v1092_v33  ;;  %vm1106_vm11 = vmor %vm1104_vm10, %vm1105_vm0  ;;  %v1125_v60 = vand.u32 2147483648, %v984_v31  ;;  %v1123_v63 = vand.u32 2147483647, %v984_v31 }
  0xea   : > { %v777_v39 = vadd.f32 %v776_v37, %v567_v35  ;;  %v1494_v40 = vmul.f32 %v1097_v38, %v3307_v26  ;;  %v1101_v41 = vsub.f32 1.0, %v1100_v34  ;;  %vm1119_vm14 = vweird.f32 %v984_v31 }
  0xeb   : > { %v1126_v7 = vor.u32 1.1754944e-38, %v1125_v60  ;;  %vm1124_vm1 = vcmp.eq.f32.partialorder %v1123_v63, 8.507059e+37 }
  0xec   : > { %v3361_v43 = vadd.f32 %v3244_v11, %v777_v39  ;;  %v1102_v44 = vmul.f32 %v2712_v5, %v1101_v41  ;;  %1570 = vmatmul.f32.gmra.mxu2 %v1494_v40  ;;  %v3380_v40 = vpop.f32.mrf.mxu3 }
  0xee   : > { %v2714_v46 = vpop.eup %2713  ;;  %v2576_v48 = vmul.f32 -1.442695, %v3361_v43  ;;  %v1103_v50 = vadd.f32 %v2712_v5, %v1102_v44 }
  0xef   : > { %v2716_v51 = vpop.eup %2715  ;;  %v985_v36 = vadd.f32 1.0, %v2714_v46 }
  0xf0   : > { %2717 = vpow2.f32 %v2576_v48  ;;  %v1107_v26 = vsel %vm1106_vm11, %v2712_v5, %v1103_v50  ;;  %v1115_v53 = vmul.f32 %v2716_v51, %v984_v31  ;;  %v570_v54 = vpop.f32.mrf.mxu0  ;;  %vm1120_vm13 = vweird.f32 %v2716_v51 }
  0xf1   : > { %2719 = vrcp.f32 %v985_v36  ;;  %v779_v55 = vpop.f32.mrf.mxu1  ;;  %v1112_v56 = vsel %vm1109_vm12, %v1111_v52, %v1107_v26  ;;  %vm1121_vm15 = vmor %vm1119_vm14, %vm1120_vm13  ;;  %v1140_v15 = vand.u32 2147483648, %v985_v36  ;;  %v1138_v19 = vand.u32 2147483647, %v985_v36 }
  0xf2   : > { %v780_v57 = vadd.f32 %v779_v55, %v570_v54  ;;  %v1495_v58 = vmul.f32 %v1112_v56, %v3323_v47  ;;  %v1116_v59 = vsub.f32 1.0, %v1115_v53  ;;  %vm1134_vm3 = vweird.f32 %v985_v36 }
  0xf3   : > { %vm1139_vm5 = vcmp.eq.f32.partialorder %v1138_v19, 8.507059e+37 }
  0xf4   : > { %v3366_v61 = vadd.f32 %v3244_v11, %v780_v57  ;;  %v1117_v62 = vmul.f32 %v2716_v51, %v1116_v59  ;;  %1573 = vmatmul.f32.gmra.mxu2 %v1495_v58 }
  0xf6   : > { %v2718_v0 = vpop.eup %2717  ;;  %v2577_v1 = vmul.f32 -1.442695, %v3366_v61  ;;  %v1118_v2 = vadd.f32 %v2716_v51, %v1117_v62 }
  0xf7   : > { %v2720_v4 = vpop.eup %2719  ;;  %v986_v6 = vadd.f32 1.0, %v2718_v0 }
  0xf8   : > { %2721 = vpow2.f32 %v2577_v1  ;;  %v1122_v47 = vsel %vm1121_vm15, %v2716_v51, %v1118_v2  ;;  %v1130_v49 = vmul.f32 %v2720_v4, %v985_v36  ;;  %v573_v8 = vpop.f32.mrf.mxu0  ;;  %vm1135_vm2 = vweird.f32 %v2720_v4  ;;  %v3388_v1 = vpop.f32.mrf.mxu3 }
  0xf9   : > { %2723 = vrcp.f32 %v986_v6  ;;  %v782_v9 = vpop.f32.mrf.mxu1  ;;  %v1127_v10 = vsel %vm1124_vm1, %v1126_v7, %v1122_v47  ;;  %vm1136_vm4 = vmor %vm1134_vm3, %vm1135_vm2  ;;  %v1155_v34 = vand.u32 2147483648, %v986_v6  ;;  %v1153_v38 = vand.u32 2147483647, %v986_v6 }
  0xfa   : > { %v783_v12 = vadd.f32 %v782_v9, %v573_v8  ;;  %v1496_v13 = vmul.f32 %v1127_v10, %v3339_v3  ;;  %v1131_v14 = vsub.f32 1.0, %v1130_v49  ;;  %v1141_v3 = vor.u32 1.1754944e-38, %v1140_v15 }
  0xfb   : > { %vm1149_vm7 = vweird.f32 %v986_v6  ;;  %vm1154_vm9 = vcmp.eq.f32.partialorder %v1153_v38, 8.507059e+37 }
  0xfc   : > { %v3373_v17 = vadd.f32 %v3244_v11, %v783_v12  ;;  %v1132_v18 = vmul.f32 %v2720_v4, %v1131_v14  ;;  %1576 = vmatmul.f32.gmra.mxu2 %v1496_v13 }
  0xfe   : > { %v2722_v20 = vpop.eup %2721  ;;  %v2578_v21 = vmul.f32 -1.442695, %v3373_v17  ;;  %v1133_v22 = vadd.f32 %v2720_v4, %v1132_v18 }
  0xff   : > { %v2724_v23 = vpop.eup %2723  ;;  %v987_v25 = vadd.f32 1.0, %v2722_v20 }
 0x100   : > { %2725 = vpow2.f32 %v2578_v21  ;;  %v1137_v28 = vsel %vm1136_vm4, %v2720_v4, %v1133_v22  ;;  %v1145_v29 = vmul.f32 %v2724_v23, %v986_v6  ;;  %v576_v30 = vpop.f32.mrf.mxu0  ;;  %vm1150_vm6 = vweird.f32 %v2724_v23 }
 0x101   : > { %2727 = vrcp.f32 %v987_v25  ;;  %v785_v27 = vpop.f32.mrf.mxu1  ;;  %v1142_v5 = vsel %vm1139_vm5, %v1141_v3, %v1137_v28  ;;  %vm1151_vm8 = vmor %vm1149_vm7, %vm1150_vm6  ;;  %v1170_v54 = vand.u32 2147483648, %v987_v25  ;;  %v1168_v57 = vand.u32 2147483647, %v987_v25  ;;  %v3395_v28 = vpop.f32.mrf.mxu3 }
 0x102   : > { %v786_v31 = vadd.f32 %v785_v27, %v576_v30  ;;  %v1497_v32 = vmul.f32 %v1142_v5, %v3352_v24  ;;  %v1146_v33 = vsub.f32 1.0, %v1145_v29  ;;  %v1156_v24 = vor.u32 1.1754944e-38, %v1155_v34 }
 0x103   : > { %vm1164_vm10 = vweird.f32 %v987_v25  ;;  %v1171_v0 = vor.u32 1.1754944e-38, %v1170_v54  ;;  %vm1169_vm12 = vcmp.eq.f32.partialorder %v1168_v57, 8.507059e+37 }
 0x104   : > { %v3378_v35 = vadd.f32 %v3244_v11, %v786_v31  ;;  %v1147_v37 = vmul.f32 %v2724_v23, %v1146_v33  ;;  %1579 = vmatmul.f32.gmra.mxu2 %v1497_v32 }
 0x106   : > { %v2726_v39 = vpop.eup %2725  ;;  %v2579_v41 = vmul.f32 -1.442695, %v3378_v35  ;;  %v1148_v42 = vadd.f32 %v2724_v23, %v1147_v37 }
 0x107   : > { %v2728_v44 = vpop.eup %2727  ;;  %v988_v45 = vadd.f32 1.0, %v2726_v39 }
 0x108   : > { %2729 = vpow2.f32 %v2579_v41  ;;  %v1152_v46 = vsel %vm1151_vm8, %v2724_v23, %v1148_v42  ;;  %v1160_v48 = vmul.f32 %v2728_v44, %v987_v25  ;;  %v579_v50 = vpop.f32.mrf.mxu0  ;;  %vm1165_vm0 = vweird.f32 %v2728_v44 }
 0x109   : > { %2731 = vrcp.f32 %v988_v45  ;;  %v788_v51 = vpop.f32.mrf.mxu1  ;;  %v1157_v36 = vsel %vm1154_vm9, %v1156_v24, %v1152_v46  ;;  %vm1166_vm11 = vmor %vm1164_vm10, %vm1165_vm0  ;;  %v1185_v9 = vand.u32 2147483648, %v988_v45  ;;  %v1183_v13 = vand.u32 2147483647, %v988_v45 }
 0x10a   : > { %v789_v52 = vadd.f32 %v788_v51, %v579_v50  ;;  %v1498_v26 = vmul.f32 %v1157_v36, %v3361_v43  ;;  %v1161_v53 = vsub.f32 1.0, %v1160_v48  ;;  %vm1179_vm14 = vweird.f32 %v988_v45 }
 0x10b   : > { %v1186_v21 = vor.u32 1.1754944e-38, %v1185_v9  ;;  %vm1184_vm1 = vcmp.eq.f32.partialorder %v1183_v13, 8.507059e+37 }
 0x10c   : > { %v3385_v55 = vadd.f32 %v3244_v11, %v789_v52  ;;  %v1162_v56 = vmul.f32 %v2728_v44, %v1161_v53  ;;  %1582 = vmatmul.f32.gmra.mxu2 %v1498_v26  ;;  %v3403_v52 = vpop.f32.mrf.mxu3 }
 0x10e   : > { %v2730_v58 = vpop.eup %2729  ;;  %v2580_v59 = vmul.f32 -1.442695, %v3385_v55  ;;  %v1163_v60 = vadd.f32 %v2728_v44, %v1162_v56 }
 0x10f   : > { %v2732_v62 = vpop.eup %2731  ;;  %v989_v63 = vadd.f32 1.0, %v2730_v58 }
 0x110   : > { %2733 = vpow2.f32 %v2580_v59  ;;  %v1167_v43 = vsel %vm1166_vm11, %v2728_v44, %v1163_v60  ;;  %v1175_v2 = vmul.f32 %v2732_v62, %v988_v45  ;;  %v582_v4 = vpop.f32.mrf.mxu0  ;;  %vm1180_vm13 = vweird.f32 %v2732_v62 }
 0x111   : > { %2735 = vrcp.f32 %v989_v63  ;;  %v791_v6 = vpop.f32.mrf.mxu1  ;;  %v1172_v7 = vsel %vm1169_vm12, %v1171_v0, %v1167_v43  ;;  %vm1181_vm15 = vmor %vm1179_vm14, %vm1180_vm13  ;;  %v1200_v5 = vand.u32 2147483648, %v989_v63  ;;  %v1198_v33 = vand.u32 2147483647, %v989_v63 }
 0x112   : > { %v792_v47 = vadd.f32 %v791_v6, %v582_v4  ;;  %v1499_v49 = vmul.f32 %v1172_v7, %v3366_v61  ;;  %v1176_v8 = vsub.f32 1.0, %v1175_v2  ;;  %vm1194_vm3 = vweird.f32 %v989_v63 }
 0x113   : > { %v1201_v42 = vor.u32 1.1754944e-38, %v1200_v5  ;;  %vm1199_vm5 = vcmp.eq.f32.partialorder %v1198_v33, 8.507059e+37 }
 0x114   : > { %v3392_v10 = vadd.f32 %v3244_v11, %v792_v47  ;;  %v1177_v12 = vmul.f32 %v2732_v62, %v1176_v8  ;;  %1585 = vmatmul.f32.gmra.mxu2 %v1499_v49  ;;  %v3413_v13 = vpop.f32.mrf.mxu3 }
 0x116   : > { %v2734_v14 = vpop.eup %2733  ;;  %v2581_v15 = vmul.f32 -1.442695, %v3392_v10  ;;  %v1178_v18 = vadd.f32 %v2732_v62, %v1177_v12 }
 0x117   : > { %v2736_v19 = vpop.eup %2735  ;;  %v990_v20 = vadd.f32 1.0, %v2734_v14 }
 0x118   : > { %2737 = vpow2.f32 %v2581_v15  ;;  %v1182_v61 = vsel %vm1181_vm15, %v2732_v62, %v1178_v18  ;;  %v1190_v22 = vmul.f32 %v2736_v19, %v989_v63  ;;  %v585_v23 = vpop.f32.mrf.mxu0  ;;  %vm1195_vm2 = vweird.f32 %v2736_v19 }
 0x119   : > { %2739 = vrcp.f32 %v990_v20  ;;  %v794_v25 = vpop.f32.mrf.mxu1  ;;  %v1187_v3 = vsel %vm1184_vm1, %v1186_v21, %v1182_v61  ;;  %vm1196_vm4 = vmor %vm1194_vm3, %vm1195_vm2  ;;  %v1215_v36 = vand.u32 2147483648, %v990_v20  ;;  %v1213_v54 = vand.u32 2147483647, %v990_v20 }
 0x11a   : > { %v795_v29 = vadd.f32 %v794_v25, %v585_v23  ;;  %v1500_v30 = vmul.f32 %v1187_v3, %v3373_v17  ;;  %v1191_v27 = vsub.f32 1.0, %v1190_v22  ;;  %vm1209_vm7 = vweird.f32 %v990_v20 }
 0x11b   : > { %vm1214_vm9 = vcmp.eq.f32.partialorder %v1213_v54, 8.507059e+37 }
 0x11c   : > { %v3399_v31 = vadd.f32 %v3244_v11, %v795_v29  ;;  %v1192_v32 = vmul.f32 %v2736_v19, %v1191_v27  ;;  %1588 = vmatmul.f32.gmra.mxu2 %v1500_v30 }
 0x11e   : > { %v2738_v34 = vpop.eup %2737  ;;  %v2582_v37 = vmul.f32 -1.442695, %v3399_v31  ;;  %v1193_v38 = vadd.f32 %v2736_v19, %v1192_v32 }
 0x11f   : > { %v2740_v39 = vpop.eup %2739  ;;  %v991_v41 = vadd.f32 1.0, %v2738_v34 }
 0x120   : > { %2741 = vpow2.f32 %v2582_v37  ;;  %v1197_v17 = vsel %vm1196_vm4, %v2736_v19, %v1193_v38  ;;  %v1205_v44 = vmul.f32 %v2740_v39, %v990_v20  ;;  %v588_v45 = vpop.f32.mrf.mxu0  ;;  %vm1210_vm6 = vweird.f32 %v2740_v39 }
 0x121   : > { %2743 = vrcp.f32 %v991_v41  ;;  %v797_v24 = vpop.f32.mrf.mxu1  ;;  %v1202_v46 = vsel %vm1199_vm5, %v1201_v42, %v1197_v17  ;;  %vm1211_vm8 = vmor %vm1209_vm7, %vm1210_vm6  ;;  %v1230_v47 = vand.u32 2147483648, %v991_v41  ;;  %v1228_v9 = vand.u32 2147483647, %v991_v41  ;;  %v3421_v42 = vpop.f32.mrf.mxu3 }
 0x122   : > { %v798_v48 = vadd.f32 %v797_v24, %v588_v45  ;;  %v1501_v50 = vmul.f32 %v1202_v46, %v3378_v35  ;;  %v1206_v51 = vsub.f32 1.0, %v1205_v44  ;;  %v1216_v35 = vor.u32 1.1754944e-38, %v1215_v36 }
 0x123   : > { %vm1224_vm10 = vweird.f32 %v991_v41  ;;  %vm1229_vm12 = vcmp.eq.f32.partialorder %v1228_v9, 8.507059e+37 }
 0x124   : > { %v3406_v26 = vadd.f32 %v3244_v11, %v798_v48  ;;  %v1207_v53 = vmul.f32 %v2740_v39, %v1206_v51  ;;  %1591 = vmatmul.f32.gmra.mxu2 %v1501_v50 }
 0x126   : > { %v2742_v56 = vpop.eup %2741  ;;  %v2583_v57 = vmul.f32 -1.442695, %v3406_v26  ;;  %v1208_v58 = vadd.f32 %v2740_v39, %v1207_v53 }
 0x127   : > { %v2744_v59 = vpop.eup %2743  ;;  %v992_v60 = vadd.f32 1.0, %v2742_v56 }
 0x128   : > { %2745 = vpow2.f32 %v2583_v57  ;;  %v1212_v62 = vsel %vm1211_vm8, %v2740_v39, %v1208_v58  ;;  %v1220_v63 = vmul.f32 %v2744_v59, %v991_v41  ;;  %v591_v0 = vpop.f32.mrf.mxu0  ;;  %vm1225_vm0 = vweird.f32 %v2744_v59 }
 0x129   : > { %2747 = vrcp.f32 %v992_v60  ;;  %v800_v43 = vpop.f32.mrf.mxu1  ;;  %v1217_v2 = vsel %vm1214_vm9, %v1216_v35, %v1212_v62  ;;  %vm1226_vm11 = vmor %vm1224_vm10, %vm1225_vm0  ;;  %v1245_v30 = vand.u32 2147483648, %v992_v60  ;;  %v1243_v32 = vand.u32 2147483647, %v992_v60 }
 0x12a   : > { %v801_v4 = vadd.f32 %v800_v43, %v591_v0  ;;  %v1502_v6 = vmul.f32 %v1217_v2, %v3385_v55  ;;  %v1221_v7 = vsub.f32 1.0, %v1220_v63  ;;  %v1231_v55 = vor.u32 1.1754944e-38, %v1230_v47  ;;  %v824_v2 = vpop.f32.mrf.mxu3 }
 0x12b   : > { %vm1239_vm14 = vweird.f32 %v992_v60  ;;  %v1246_v41 = vor.u32 1.1754944e-38, %v1245_v30  ;;  %vm1244_vm1 = vcmp.eq.f32.partialorder %v1243_v32, 8.507059e+37 }
 0x12c   : > { %v3411_v49 = vadd.f32 %v3244_v11, %v801_v4  ;;  %v1222_v8 = vmul.f32 %v2744_v59, %v1221_v7  ;;  %1594 = vmatmul.f32.gmra.mxu2 %v1502_v6  ;;  %v1537_v7 = vld [vmem:[%s4207_s6] sm:$0x7] }
 0x12e   : > { %v2746_v12 = vpop.eup %2745  ;;  %v2584_v14 = vmul.f32 -1.442695, %v3411_v49  ;;  %v1223_v15 = vadd.f32 %v2744_v59, %v1222_v8 }
 0x12f   : > { %v2748_v18 = vpop.eup %2747  ;;  %v993_v19 = vadd.f32 1.0, %v2746_v12 }
 0x130   : > { %2749 = vpow2.f32 %v2584_v14  ;;  %v1227_v20 = vsel %vm1226_vm11, %v2744_v59, %v1223_v15  ;;  %v1235_v21 = vmul.f32 %v2748_v18, %v992_v60  ;;  %v594_v61 = vpop.f32.mrf.mxu0  ;;  %vm1240_vm13 = vweird.f32 %v2748_v18 }
 0x131   : > { %2751 = vrcp.f32 %v993_v19  ;;  %v803_v22 = vpop.f32.mrf.mxu1  ;;  %v1232_v23 = vsel %vm1229_vm12, %v1231_v55, %v1227_v20  ;;  %vm1241_vm15 = vmor %vm1239_vm14, %vm1240_vm13  ;;  %v1260_v51 = vand.u32 2147483648, %v993_v19  ;;  %v1258_v54 = vand.u32 2147483647, %v993_v19 }
 0x132   : > { %v804_v25 = vadd.f32 %v803_v22, %v594_v61  ;;  %v1503_v3 = vmul.f32 %v1232_v23, %v3392_v10  ;;  %v1236_v29 = vsub.f32 1.0, %v1235_v21  ;;  %vm1254_vm3 = vweird.f32 %v993_v19 }
 0x133   : > { %v1261_v35 = vor.u32 1.1754944e-38, %v1260_v51  ;;  %vm1259_vm5 = vcmp.eq.f32.partialorder %v1258_v54, 8.507059e+37  ;;  %v3438_v15 = vperm.slane %v1537_v7, 0 }
 0x134   : > { %v3418_v27 = vadd.f32 %v3244_v11, %v804_v25  ;;  %v1237_v5 = vmul.f32 %v2748_v18, %v1236_v29  ;;  %1597 = vmatmul.f32.gmra.mxu2 %v1503_v3 }
 0x136   : > { %v2750_v33 = vpop.eup %2749  ;;  %v2585_v34 = vmul.f32 -1.442695, %v3418_v27  ;;  %v1238_v37 = vadd.f32 %v2748_v18, %v1237_v5 }
 0x137   : > { %v2752_v38 = vpop.eup %2751  ;;  %v994_v39 = vadd.f32 1.0, %v2750_v33  ;;  %v825_v33 = vadd.f32 %v824_v2, %v3370_v16 }
 0x138   : > { %2753 = vpow2.f32 %v2585_v34  ;;  %v1242_v10 = vsel %vm1241_vm15, %v2748_v18, %v1238_v37  ;;  %v1250_v17 = vmul.f32 %v2752_v38, %v993_v19  ;;  %v597_v44 = vpop.f32.mrf.mxu0  ;;  %vm1255_vm2 = vweird.f32 %v2752_v38  ;;  %v827_v37 = vpop.f32.mrf.mxu3 }
 0x139   : > { %2755 = vrcp.f32 %v994_v39  ;;  %v806_v45 = vpop.f32.mrf.mxu1  ;;  %v1247_v24 = vsel %vm1244_vm1, %v1246_v41, %v1242_v10  ;;  %vm1256_vm4 = vmor %vm1254_vm3, %vm1255_vm2  ;;  %v1275_v8 = vand.u32 2147483648, %v994_v39  ;;  %v1273_v14 = vand.u32 2147483647, %v994_v39 }
 0x13a   : > { %v807_v46 = vadd.f32 %v806_v45, %v597_v44  ;;  %v1504_v48 = vmul.f32 %v1247_v24, %v3399_v31  ;;  %v1251_v50 = vsub.f32 1.0, %v1250_v17  ;;  %vm1269_vm7 = vweird.f32 %v994_v39 }
 0x13b   : > { %v1276_v21 = vor.u32 1.1754944e-38, %v1275_v8  ;;  %vm1274_vm9 = vcmp.eq.f32.partialorder %v1273_v14, 8.507059e+37 }
 0x13c   : > { %v3425_v36 = vadd.f32 %v3244_v11, %v807_v46  ;;  %v1252_v53 = vmul.f32 %v2752_v38, %v1251_v50  ;;  %1600 = vmatmul.f32.gmra.mxu2 %v1504_v48 }
 0x13e   : > { %v2754_v56 = vpop.eup %2753  ;;  %v2586_v57 = vmul.f32 -1.442695, %v3425_v36  ;;  %v1253_v58 = vadd.f32 %v2752_v38, %v1252_v53 }
 0x13f   : > { %v2756_v59 = vpop.eup %2755  ;;  %v3428_v60 = vadd.f32 1.0, %v2754_v56 }
 0x140   : > { %2757 = vpow2.f32 %v2586_v57  ;;  %v1257_v31 = vsel %vm1256_vm4, %v2752_v38, %v1253_v58  ;;  %v1265_v62 = vmul.f32 %v2756_v59, %v994_v39  ;;  %v600_v63 = vpop.f32.mrf.mxu0  ;;  %vm1270_vm6 = vweird.f32 %v2756_v59  ;;  %v3455_v38 = vld [vmem:[%s4205_s4] ss:$0 sm:$0xff]  ;;  %v830_v2 = vpop.f32.mrf.mxu3 }
 0x141   : > { %2759 = vrcp.f32 %v3428_v60  ;;  %v809_v0 = vpop.f32.mrf.mxu1  ;;  %v1262_v43 = vsel %vm1259_vm5, %v1261_v35, %v1257_v31  ;;  %vm1271_vm8 = vmor %vm1269_vm7, %vm1270_vm6  ;;  %v1290_v34 = vand.u32 2147483648, %v3428_v60  ;;  %vm1284_vm10 = vweird.f32 %v3428_v60 }
 0x142   : > { %v810_v4 = vadd.f32 %v809_v0, %v600_v63  ;;  %v1505_v6 = vmul.f32 %v1262_v43, %v3406_v26  ;;  %v1266_v47 = vsub.f32 1.0, %v1265_v62  ;;  %v3464_v45 = vadd.f32 %v3455_v38, %v825_v33 }
 0x143   : > { %v1291_v46 = vor.u32 1.1754944e-38, %v1290_v34 }
 0x144   : > { %v3436_v9 = vadd.f32 %v3244_v11, %v810_v4  ;;  %v1267_v12 = vmul.f32 %v2756_v59, %v1266_v47  ;;  %1603 = vmatmul.f32.gmra.mxu2 %v1505_v6  ;;  %v2592_v35 = vmul.f32 -1.442695, %v3464_v45 }
 0x146   : > { %v2758_v18 = vpop.eup %2757  ;;  %v2587_v19 = vmul.f32 -1.442695, %v3436_v9  ;;  %v1268_v55 = vadd.f32 %v2756_v59, %v1267_v12 }
 0x147   : > { %v2760_v26 = vpop.eup %2759  ;;  %v3441_v20 = vadd.f32 1.0, %v2758_v18  ;;  %v1556_v61 = vpop.f32.mrf.mxu2 }
 0x148   : > { %2761 = vpow2.f32 %v2587_v19  ;;  %v1272_v11 = vsel %vm1271_vm8, %v2756_v59, %v1268_v55  ;;  %v1280_v22 = vmul.f32 %v2760_v26, %v3428_v60  ;;  %v3446_v23 = vadd.f32 %v1556_v61, %v3438_v15  ;;  %v603_v25 = vpop.f32.mrf.mxu0 }
 0x149   : > { %2763 = vrcp.f32 %v3441_v20  ;;  %v812_v3 = vpop.f32.mrf.mxu1  ;;  %v1277_v29 = vsel %vm1274_vm9, %v1276_v21, %v1272_v11  ;;  %vm1285_vm0 = vweird.f32 %v2760_v26  ;;  %v1305_v31 = vand.u32 2147483648, %v3441_v20 }
 0x14a   : > { %v813_v30 = vadd.f32 %v812_v3, %v603_v25  ;;  %v1506_v5 = vmul.f32 %v1277_v29, %v3411_v49  ;;  %v1281_v32 = vsub.f32 1.0, %v1280_v22  ;;  %1652 = vadd.xlane.f32.xlu0 %v3446_v23  ;;  %v1288_v49 = vand.u32 2147483647, %v3428_v60  ;;  %vm1286_vm11 = vmor %vm1284_vm10, %vm1285_vm0 }
 0x14b   : > { %v1303_v0 = vand.u32 2147483647, %v3441_v20  ;;  %vm1299_vm14 = vweird.f32 %v3441_v20  ;;  %v1306_v47 = vor.u32 1.1754944e-38, %v1305_v31 }
 0x14c   : > { %v3458_v39 = vadd.f32 %v3455_v38, %v813_v30  ;;  %v1282_v41 = vmul.f32 %v2760_v26, %v1281_v32  ;;  %1606 = vmatmul.f32.gmra.mxu2 %v1506_v5  ;;  %vm1289_vm12 = vcmp.eq.f32.partialorder %v1288_v49, 8.507059e+37 }
 0x14d   : > { %vm1304_vm1 = vcmp.eq.f32.partialorder %v1303_v0, 8.507059e+37 }
 0x14e   : > { %v2762_v10 = vpop.eup %2761  ;;  %v2588_v16 = vmul.f32 -1.442695, %v3458_v39  ;;  %v1283_v17 = vadd.f32 %v2760_v26, %v1282_v41  ;;  %v833_v41 = vpop.f32.mrf.mxu3 }
 0x14f   : > { %v2764_v44 = vpop.eup %2763  ;;  %v3466_v24 = vadd.f32 1.0, %v2762_v10  ;;  %v1559_v48 = vpop.f32.mrf.mxu2 }
 0x150   : > { %2765 = vpow2.f32 %v2588_v16  ;;  %v1287_v50 = vsel %vm1286_vm11, %v2760_v26, %v1283_v17  ;;  %v1295_v51 = vmul.f32 %v2764_v44, %v3441_v20  ;;  %v3471_v53 = vadd.f32 %v1559_v48, %v3438_v15  ;;  %v606_v54 = vpop.f32.mrf.mxu0 }
 0x151   : > { %2767 = vrcp.f32 %v3466_v24  ;;  %v815_v56 = vpop.f32.mrf.mxu1  ;;  %v1292_v57 = vsel %vm1289_vm12, %v1291_v46, %v1287_v50  ;;  %vm1300_vm13 = vweird.f32 %v2764_v44  ;;  %v828_v20 = vadd.f32 %v827_v37, %v3380_v40 }
 0x152   : > { %v816_v58 = vadd.f32 %v815_v56, %v606_v54  ;;  %v1507_v59 = vmul.f32 %v1292_v57, %v3418_v27  ;;  %v1296_v60 = vsub.f32 1.0, %v1295_v51  ;;  %1654 = vadd.xlane.f32.xlu0 %v3471_v53  ;;  %2769 = vpow2.f32 %v2592_v35  ;;  %vm1301_vm15 = vmor %vm1299_vm14, %vm1300_vm13 }
 0x153   : > { %v1320_v22 = vand.u32 2147483648, %v3466_v24  ;;  %v1318_v29 = vand.u32 2147483647, %v3466_v24  ;;  %v3499_v40 = vadd.f32 %v3455_v38, %v828_v20  ;;  %vm1314_vm3 = vweird.f32 %v3466_v24 }
 0x154   : > { %v3478_v62 = vadd.f32 %v3455_v38, %v816_v58  ;;  %v1297_v63 = vmul.f32 %v2764_v44, %v1296_v60  ;;  %1609 = vmatmul.f32.gmra.mxu2 %v1507_v59  ;;  %v831_v17 = vadd.f32 %v830_v2, %v3388_v1 }
 0x155   : > { %v1321_v37 = vor.u32 1.1754944e-38, %v1320_v22  ;;  %vm1319_vm5 = vcmp.eq.f32.partialorder %v1318_v29, 8.507059e+37  ;;  %v2593_v50 = vmul.f32 -1.442695, %v3499_v40 }
 0x156   : > { %v2766_v43 = vpop.eup %2765  ;;  %v2589_v4 = vmul.f32 -1.442695, %v3478_v62  ;;  %v1298_v27 = vadd.f32 %v2764_v44, %v1297_v63  ;;  %v3521_v60 = vadd.f32 %v3455_v38, %v831_v17 }
 0x157   : > { %v2768_v6 = vpop.eup %2767  ;;  %v3483_v7 = vadd.f32 1.0, %v2766_v43  ;;  %v1562_v8 = vpop.f32.mrf.mxu2 }
 0x158   : > { %2771 = vpow2.f32 %v2589_v4  ;;  %v1302_v12 = vsel %vm1301_vm15, %v2764_v44, %v1298_v27  ;;  %v1310_v14 = vmul.f32 %v2768_v6, %v3466_v24  ;;  %v3488_v18 = vadd.f32 %v1562_v8, %v3438_v15  ;;  %v609_v19 = vpop.f32.mrf.mxu0  ;;  %v2770_v30 = vpop.eup %2769 }
 0x159   : > { %2773 = vrcp.f32 %v3483_v7  ;;  %v818_v55 = vpop.f32.mrf.mxu1  ;;  %v1307_v26 = vsel %vm1304_vm1, %v1306_v47, %v1302_v12  ;;  %vm1315_vm2 = vweird.f32 %v2768_v6  ;;  %v3513_v57 = vadd.f32 1.0, %v2770_v30 }
 0x15a   : > { %v819_v21 = vadd.f32 %v818_v55, %v609_v19  ;;  %v1508_v61 = vmul.f32 %v1307_v26, %v3425_v36  ;;  %v1311_v11 = vsub.f32 1.0, %v1310_v14  ;;  %1656 = vadd.xlane.f32.xlu1 %v3488_v18  ;;  %vm1316_vm4 = vmor %vm1314_vm3, %vm1315_vm2  ;;  %v1335_v59 = vand.u32 2147483648, %v3483_v7  ;;  %v836_v19 = vpop.f32.mrf.mxu3 }
 0x15b   : > { %v1333_v35 = vand.u32 2147483647, %v3483_v7  ;;  %vm1329_vm7 = vweird.f32 %v3483_v7  ;;  %v2594_v47 = vmul.f32 -1.442695, %v3521_v60  ;;  %v834_v8 = vadd.f32 %v833_v41, %v3395_v28 }
 0x15c   : > { %v3495_v25 = vadd.f32 %v3455_v38, %v819_v21  ;;  %v1312_v3 = vmul.f32 %v2768_v6, %v1311_v11  ;;  %1612 = vmatmul.f32.gmra.mxu2 %v1508_v61  ;;  %v1336_v27 = vor.u32 1.1754944e-38, %v1335_v59  ;;  %vm1389_vm3 = vweird.f32 %v3513_v57 }
 0x15d   : > { %vm1334_vm9 = vcmp.eq.f32.partialorder %v1333_v35, 8.507059e+37  ;;  %v3543_v22 = vadd.f32 %v3455_v38, %v834_v8 }
 0x15e   : > { %v2772_v5 = vpop.eup %2771  ;;  %v2590_v36 = vmul.f32 -1.442695, %v3495_v25  ;;  %v1313_v32 = vadd.f32 %v2768_v6, %v1312_v3 }
 0x15f   : > { %v2774_v33 = vpop.eup %2773  ;;  %v3503_v34 = vadd.f32 1.0, %v2772_v5  ;;  %v1565_v49 = vpop.f32.mrf.mxu2 }
 0x160   : > { %2775 = vpow2.f32 %v2590_v36  ;;  %v1317_v10 = vsel %vm1316_vm4, %v2768_v6, %v1313_v32  ;;  %v1325_v16 = vmul.f32 %v2774_v33, %v3483_v7  ;;  %v3509_v44 = vadd.f32 %v1565_v49, %v3438_v15  ;;  %v612_v24 = vpop.f32.mrf.mxu0 }
 0x161   : > { %2777 = vrcp.f32 %v3503_v34  ;;  %v821_v46 = vpop.f32.mrf.mxu1  ;;  %v1322_v48 = vsel %vm1319_vm5, %v1321_v37, %v1317_v10  ;;  %vm1330_vm6 = vweird.f32 %v2774_v33  ;;  %v1350_v26 = vand.u32 2147483648, %v3503_v34 }
 0x162   : > { %v822_v51 = vadd.f32 %v821_v46, %v612_v24  ;;  %v1509_v54 = vmul.f32 %v1322_v48, %v3436_v9  ;;  %v1326_v56 = vsub.f32 1.0, %v1325_v16  ;;  %1658 = vadd.xlane.f32.xlu1 %v3509_v44  ;;  %2779 = vpow2.f32 %v2593_v50  ;;  %vm1331_vm8 = vmor %vm1329_vm7, %vm1330_vm6 }
 0x163   : > { %2781 = vrcp.f32 %v3513_v57  ;;  %v1348_v61 = vand.u32 2147483647, %v3503_v34  ;;  %vm1344_vm10 = vweird.f32 %v3503_v34  ;;  %v1351_v5 = vor.u32 1.1754944e-38, %v1350_v26 }
 0x164   : > { %v3517_v1 = vadd.f32 %v3455_v38, %v822_v51  ;;  %v1327_v58 = vmul.f32 %v2774_v33, %v1326_v56  ;;  %1615 = vmatmul.f32.gmra.mxu2 %v1509_v54  ;;  %v837_v49 = vadd.f32 %v836_v19, %v3403_v52  ;;  %v839_v51 = vpop.f32.mrf.mxu3 }
 0x165   : > { %vm1349_vm12 = vcmp.eq.f32.partialorder %v1348_v61, 8.507059e+37  ;;  %v1393_v61 = vand.u32 2147483647, %v3513_v57 }
 0x166   : > { %v2776_v31 = vpop.eup %2775  ;;  %v2591_v9 = vmul.f32 -1.442695, %v3517_v1  ;;  %v1328_v63 = vadd.f32 %v2774_v33, %v1327_v58  ;;  %v3565_v52 = vadd.f32 %v3455_v38, %v837_v49 }
 0x167   : > { %v2778_v0 = vpop.eup %2777  ;;  %v3527_v43 = vadd.f32 1.0, %v2776_v31  ;;  %v1568_v2 = vpop.f32.mrf.mxu2 }
 0x168   : > { %2783 = vpow2.f32 %v2591_v9  ;;  %v1332_v4 = vsel %vm1331_vm8, %v2774_v33, %v1328_v63  ;;  %v1340_v6 = vmul.f32 %v2778_v0, %v3503_v34  ;;  %v3534_v7 = vadd.f32 %v1568_v2, %v3438_v15  ;;  %v2780_v20 = vpop.eup %2779 }
 0x169   : > { %2785 = vrcp.f32 %v3527_v43  ;;  %v1337_v12 = vsel %vm1334_vm9, %v1336_v27, %v1332_v4  ;;  %vm1345_vm0 = vweird.f32 %v2778_v0  ;;  %v3540_v11 = vpop.eup %2781  ;;  %v3546_v29 = vadd.f32 1.0, %v2780_v20 }
 0x16a   : > { %v1341_v14 = vsub.f32 1.0, %v1340_v6  ;;  %v1510_v55 = vmul.f32 %v1337_v12, %v3458_v39  ;;  %1660 = vadd.xlane.f32.xlu2 %v3534_v7  ;;  %2787 = vpow2.f32 %v2594_v47  ;;  %vm1346_vm11 = vmor %vm1344_vm10, %vm1345_vm0  ;;  %v2595_v34 = vmul.f32 -1.442695, %v3543_v22 }
 0x16b   : > { %v1365_v17 = vand.u32 2147483648, %v3527_v43  ;;  %v1385_v24 = vmul.f32 %v3540_v11, %v3513_v57  ;;  %v1363_v50 = vand.u32 2147483647, %v3527_v43  ;;  %vm1359_vm14 = vweird.f32 %v3527_v43 }
 0x16c   : > { %v1342_v21 = vmul.f32 %v2778_v0, %v1341_v14  ;;  %1618 = vmatmul.f32.gmra.mxu2 %v1510_v55  ;;  %v2596_v4 = vmul.f32 -1.442695, %v3565_v52  ;;  %vm1390_vm4 = vweird.f32 %v3540_v11  ;;  %v842_v20 = vpop.f32.mrf.mxu3  ;;  %vm1394_vm9 = vcmp.eq.f32.partialorder %v1393_v61, 8.507059e+37 }
 0x16d   : > { %v1366_v58 = vor.u32 1.1754944e-38, %v1365_v17  ;;  %v1386_v59 = vsub.f32 1.0, %v1385_v24  ;;  %vm1364_vm1 = vcmp.eq.f32.partialorder %v1363_v50, 8.507059e+37  ;;  %vm3606_vm8 = vmor %vm1389_vm3, %vm1390_vm4  ;;  %v843_v49 = vadd.f32 %v842_v20, %v3421_v42 }
 0x16e   : > { %v2784_v28 = vpop.eup %2783  ;;  %v1343_v3 = vadd.f32 %v2778_v0, %v1342_v21  ;;  %vm1404_vm0 = vweird.f32 %v3546_v29  ;;  %v1410_v50 = vand.u32 2147483648, %v3546_v29 }
 0x16f   : > { %v2786_v39 = vpop.eup %2785  ;;  %v3548_v30 = vadd.f32 1.0, %v2784_v28  ;;  %v1571_v32 = vpop.f32.mrf.mxu2  ;;  %v1387_v8 = vmul.f32 %v3540_v11, %v1386_v59  ;;  %v1395_v28 = vand.u32 2147483648, %v3513_v57  ;;  %v3622_v42 = vadd.f32 %v3455_v38, %v843_v49 }
 0x170   : > { %v1355_v36 = vmul.f32 %v2786_v39, %v3527_v43  ;;  %v1347_v33 = vsel %vm1346_vm11, %v2778_v0, %v1343_v3  ;;  %v3553_v37 = vadd.f32 %v1571_v32, %v3438_v15  ;;  %v2788_v46 = vpop.eup %2787  ;;  %vm1360_vm13 = vweird.f32 %v2786_v39 }
 0x171   : > { %2789 = vrcp.f32 %v3548_v30  ;;  %v1352_v41 = vsel %vm1349_vm12, %v1351_v5, %v1347_v33  ;;  %v3568_v56 = vadd.f32 1.0, %v2788_v46  ;;  %vm1361_vm15 = vmor %vm1359_vm14, %vm1360_vm13  ;;  %v840_v43 = vadd.f32 %v839_v51, %v3413_v13 }
 0x172   : > { %v1356_v10 = vsub.f32 1.0, %v1355_v36  ;;  %v1511_v16 = vmul.f32 %v1352_v41, %v3478_v62  ;;  %2791 = vrcp.f32 %v3546_v29  ;;  %1662 = vadd.xlane.f32.xlu2 %v3553_v37  ;;  %v1380_v47 = vand.u32 2147483648, %v3548_v30 }
 0x173   : > { %2793 = vpow2.f32 %v2595_v34  ;;  %v1378_v19 = vand.u32 2147483647, %v3548_v30  ;;  %vm1374_vm5 = vweird.f32 %v3548_v30  ;;  %v1388_v5 = vadd.f32 %v3540_v11, %v1387_v8 }
 0x174   : > { %v1357_v48 = vmul.f32 %v2786_v39, %v1356_v10  ;;  %1621 = vmatmul.f32.gmra.mxu2 %v1511_v16  ;;  %2795 = vrcp.f32 %v3568_v56  ;;  %v1381_v21 = vor.u32 1.1754944e-38, %v1380_v47  ;;  %v1396_v16 = vor.u32 1.1754944e-38, %v1395_v28 }
 0x175   : > { %2797 = vpow2.f32 %v2596_v4  ;;  %vm1379_vm7 = vcmp.eq.f32.partialorder %v1378_v19, 8.507059e+37  ;;  %v1392_v57 = vsel %vm3606_vm8, %v3540_v11, %v1388_v5  ;;  %vm1419_vm13 = vweird.f32 %v3568_v56 }
 0x176   : > { %v1358_v62 = vadd.f32 %v2786_v39, %v1357_v48  ;;  %v1397_v48 = vsel %vm1394_vm9, %v1396_v16, %v1392_v57 }
 0x177   : > { %v2790_v54 = vpop.eup %2789  ;;  %v1574_v31 = vpop.f32.mrf.mxu2 }
 0x178   : > { %v1362_v35 = vsel %vm1361_vm15, %v2786_v39, %v1358_v62  ;;  %v1370_v9 = vmul.f32 %v2790_v54, %v3548_v30  ;;  %v3571_v63 = vpop.eup %2791  ;;  %v3574_v2 = vadd.f32 %v1574_v31, %v3438_v15  ;;  %vm1375_vm2 = vweird.f32 %v2790_v54 }
 0x179   : > { %v1367_v0 = vsel %vm1364_vm1, %v1366_v58, %v1362_v35  ;;  %v2794_v12 = vpop.eup %2793  ;;  %v1400_v13 = vmul.f32 %v3571_v63, %v3546_v29  ;;  %vm1376_vm6 = vmor %vm1374_vm5, %vm1375_vm2  ;;  %vm1405_vm10 = vweird.f32 %v3571_v63  ;;  %v1408_v62 = vand.u32 2147483647, %v3546_v29 }
 0x17a   : > { %v1512_v27 = vmul.f32 %v1367_v0, %v3495_v25  ;;  %v1371_v6 = vsub.f32 1.0, %v1370_v9  ;;  %1664 = vadd.xlane.f32.xlu0 %v3574_v2  ;;  %v3589_v25 = vadd.f32 %v3455_v38, %v840_v43  ;;  %v3592_v26 = vadd.f32 1.0, %v2794_v12  ;;  %v3597_v32 = vpop.eup %2795  ;;  %vm3634_vm11 = vmor %vm1404_vm0, %vm1405_vm10 }
 0x17b   : > { %v1401_v36 = vsub.f32 1.0, %v1400_v13  ;;  %v2798_v17 = vpop.eup %2797  ;;  %v1415_v46 = vmul.f32 %v3597_v32, %v3568_v56  ;;  %v2598_v35 = vmul.f32 -1.442695, %v3622_v42  ;;  %v1514_v31 = vmul.f32 %v1397_v48, %v3464_v45 }
 0x17c   : > { %1624 = vmatmul.f32.vlgmr.msra.gmra.mxu3 %v1512_v27  ;;  %v1372_v14 = vmul.f32 %v2790_v54, %v1371_v6  ;;  %v2597_v34 = vmul.f32 -1.442695, %v3589_v25  ;;  %2799 = vrcp.f32 %v3592_v26  ;;  %v1411_v9 = vor.u32 1.1754944e-38, %v1410_v50 }
 0x17d   : > { %v1402_v24 = vmul.f32 %v3571_v63, %v1401_v36  ;;  %vm1409_vm12 = vcmp.eq.f32.partialorder %v1408_v62, 8.507059e+37  ;;  %vm1420_vm14 = vweird.f32 %v3597_v32  ;;  %v1425_v6 = vand.u32 2147483648, %v3568_v56 }
 0x17e   : > { %v1373_v55 = vadd.f32 %v2790_v54, %v1372_v14  ;;  %2801 = vpow2.f32 %v2597_v34  ;;  %vm1421_vm15 = vmor %vm1419_vm13, %vm1420_vm14  ;;  %vm1434_vm2 = vweird.f32 %v3592_v26  ;;  %v1438_v36 = vand.u32 2147483647, %v3592_v26 }
 0x17f   : > { %v1577_v3 = vpop.f32.mrf.mxu2  ;;  %v1403_v51 = vadd.f32 %v3571_v63, %v1402_v24 }
 0x180   : > { %v1377_v39 = vsel %vm1376_vm6, %v2790_v54, %v1373_v55  ;;  %v3600_v33 = vadd.f32 %v1577_v3, %v3438_v15  ;;  %v1416_v54 = vsub.f32 1.0, %v1415_v46  ;;  %v1426_v55 = vor.u32 1.1754944e-38, %v1425_v6 }
 0x181   : > { %v1382_v30 = vsel %vm1379_vm7, %v1381_v21, %v1377_v39  ;;  %v1407_v29 = vsel %vm3634_vm11, %v3571_v63, %v1403_v51  ;;  %v1423_v63 = vand.u32 2147483647, %v3568_v56  ;;  %vm1439_vm5 = vcmp.eq.f32.partialorder %v1438_v36, 8.507059e+37 }
 0x182   : > { %v1513_v10 = vmul.f32 %v1382_v30, %v3517_v1  ;;  %1666 = vadd.xlane.f32.xlu1 %v3600_v33  ;;  %v3626_v1 = vadd.f32 1.0, %v2798_v17  ;;  %v2800_v58 = vpop.eup %2799  ;;  %v1417_v4 = vmul.f32 %v3597_v32, %v1416_v54  ;;  %v1412_v27 = vsel %vm1409_vm12, %v1411_v9, %v1407_v29 }
 0x183   : > { %v1430_v43 = vmul.f32 %v2800_v58, %v3592_v26  ;;  %v1515_v13 = vmul.f32 %v1412_v27, %v3499_v40  ;;  %vm1424_vm1 = vcmp.eq.f32.partialorder %v1423_v63, 8.507059e+37  ;;  %vm1435_vm3 = vweird.f32 %v2800_v58 }
 0x184   : > { %1627 = vmatmul.f32.gmra.mxu3 %v1513_v10  ;;  %2803 = vrcp.f32 %v3626_v1  ;;  %v2802_v0 = vpop.eup %2801  ;;  %v1418_v8 = vadd.f32 %v3597_v32, %v1417_v4  ;;  %v1440_v40 = vand.u32 2147483648, %v3592_v26  ;;  %vm1436_vm4 = vmor %vm1434_vm2, %vm1435_vm3  ;;  %vm1449_vm6 = vweird.f32 %v3626_v1 }
 0x185   : > { %2805 = vpow2.f32 %v2598_v35  ;;  %v3649_v45 = vadd.f32 1.0, %v2802_v0  ;;  %v1431_v12 = vsub.f32 1.0, %v1430_v43  ;;  %v1455_v57 = vand.u32 2147483648, %v3626_v1 }
 0x186   : > { %v1422_v21 = vsel %vm1421_vm15, %v3597_v32, %v1418_v8  ;;  %v1441_v49 = vor.u32 1.1754944e-38, %v1440_v40  ;;  %v2954_v54 = vmov 128.0  }
 0x187   : > { %v1580_v11 = vpop.f32.mrf.mxu2  ;;  %2807 = vrcp.f32 %v3649_v45  ;;  %v1432_v61 = vmul.f32 %v2800_v58, %v1431_v12  ;;  %v1427_v3 = vsel %vm1424_vm1, %v1426_v55, %v1422_v21  ;;  %v1456_v62 = vor.u32 1.1754944e-38, %v1455_v57 }
 0x188   : > { %v3632_v59 = vadd.f32 %v1580_v11, %v3438_v15  ;;  %v1516_v34 = vmul.f32 %v1427_v3, %v3521_v60  ;;  %v1453_v60 = vand.u32 2147483647, %v3626_v1  ;;  %vm1464_vm0 = vweird.f32 %v3649_v45 }
 0x189   : > { %v1433_v5 = vadd.f32 %v2800_v58, %v1432_v61 }
 0x18a   : > { %1668 = vadd.xlane.f32.xlu2 %v3632_v59  ;;  %v2804_v14 = vpop.eup %2803  ;;  %vm1454_vm9 = vcmp.eq.f32.partialorder %v1453_v60, 8.507059e+37 }
 0x18b   : > { %v2806_v20 = vpop.eup %2805  ;;  %v1445_v56 = vmul.f32 %v2804_v14, %v3626_v1  ;;  %v1437_v10 = vsel %vm1436_vm4, %v2800_v58, %v1433_v5  ;;  %vm1450_vm7 = vweird.f32 %v2804_v14 }
 0x18c   : > { %1630 = vmatmul.f32.gmra.mxu3 %v1514_v31  ;;  %v3663_v28 = vadd.f32 1.0, %v2806_v20  ;;  %v1442_v26 = vsel %vm1439_vm5, %v1441_v49, %v1437_v10  ;;  %vm1451_vm8 = vmor %vm1449_vm6, %vm1450_vm7  ;;  %v1470_v31 = vand.u32 2147483648, %v3649_v45 }
 0x18d   : > { %v1446_v30 = vsub.f32 1.0, %v1445_v56  ;;  %v2808_v41 = vpop.eup %2807  ;;  %v1517_v51 = vmul.f32 %v1442_v26, %v3543_v22  ;;  %v1468_v22 = vand.u32 2147483647, %v3649_v45 }
 0x18e   : > { %2809 = vrcp.f32 %v3663_v28  ;;  %v1460_v17 = vmul.f32 %v2808_v41, %v3649_v45  ;;  %vm1465_vm10 = vweird.f32 %v2808_v41  ;;  %v1471_v6 = vor.u32 1.1754944e-38, %v1470_v31 }
 0x18f   : > { %v1583_v47 = vpop.f32.mrf.mxu2  ;;  %v1447_v16 = vmul.f32 %v2804_v14, %v1446_v30  ;;  %2811 = vrcp.f32 %v2954_v54  ;;  %vm1466_vm11 = vmor %vm1464_vm0, %vm1465_vm10  ;;  %vm1469_vm12 = vcmp.eq.f32.partialorder %v1468_v22, 8.507059e+37  ;;  %vm1479_vm13 = vweird.f32 %v3663_v28 }
 0x190   : > { %v3655_v19 = vadd.f32 %v1583_v47, %v3438_v15  ;;  %v1461_v48 = vsub.f32 1.0, %v1460_v17  ;;  %v1485_v12 = vand.u32 2147483648, %v3663_v28  ;;  %v1483_v55 = vand.u32 2147483647, %v3663_v28 }
 0x191   : > { %v1448_v46 = vadd.f32 %v2804_v14, %v1447_v16 }
 0x192   : > { %1670 = vadd.xlane.f32.xlu0 %v3655_v19  ;;  %v1462_v38 = vmul.f32 %v2808_v41, %v1461_v48  ;;  %v1486_v61 = vor.u32 1.1754944e-38, %v1485_v12  ;;  %vm1484_vm1 = vcmp.eq.f32.partialorder %v1483_v55, 8.507059e+37 }
 0x193   : > { %v1452_v58 = vsel %vm1451_vm8, %v2804_v14, %v1448_v46 }
 0x194   : > { %1633 = vmatmul.f32.gmra.mxu3 %v1515_v13  ;;  %v2810_v50 = vpop.eup %2809  ;;  %v1457_v1 = vsel %vm1454_vm9, %v1456_v62, %v1452_v58  ;;  %v1463_v0 = vadd.f32 %v2808_v41, %v1462_v38 }
 0x195   : > { %v1475_v35 = vmul.f32 %v2810_v50, %v3663_v28  ;;  %v2812_v4 = vpop.eup %2811  ;;  %v1518_v27 = vmul.f32 %v1457_v1, %v3565_v52  ;;  %vm1480_vm14 = vweird.f32 %v2810_v50 }
 0x196   : > { %v1467_v47 = vsel %vm1466_vm11, %v2808_v41, %v1463_v0  ;;  %v1717_v63 = vmul.f32 128.0, %v2812_v4  ;;  %vm1481_vm15 = vmor %vm1479_vm13, %vm1480_vm14  ;;  %vm1721_vm2 = vweird.f32 %v2812_v4 }
 0x197   : > { %v1586_v39 = vpop.f32.mrf.mxu2  ;;  %v1476_v29 = vsub.f32 1.0, %v1475_v35  ;;  %v1472_v45 = vsel %vm1469_vm12, %v1471_v6, %v1467_v47 }
 0x198   : > { %v3668_v32 = vadd.f32 %v1586_v39, %v3438_v15  ;;  %v1718_v20 = vsub.f32 1.0, %v1717_v63  ;;  %v1519_v21 = vmul.f32 %v1472_v45, %v3589_v25 }
 0x199   : > { %v1477_v8 = vmul.f32 %v2810_v50, %v1476_v29 }
 0x19a   : > { %1672 = vadd.xlane.f32.xlu1 %v3668_v32  ;;  %v1719_v3 = vmul.f32 %v2812_v4, %v1718_v20 }
 0x19b   : > { %v1478_v13 = vadd.f32 %v2810_v50, %v1477_v8 }
 0x19c   : > { %1636 = vmatmul.f32.gmra.mxu3 %v1516_v34  ;;  %v1720_v5 = vadd.f32 %v2812_v4, %v1719_v3 }
 0x19d   : > { %v1482_v56 = vsel %vm1481_vm15, %v2810_v50, %v1478_v13 }
 0x19e   : > { %v1487_v40 = vsel %vm1484_vm1, %v1486_v61, %v1482_v56  ;;  %v3704_v25 = vsel %vm1721_vm2, %v2812_v4, %v1720_v5 }
 0x19f   : > { %v1589_v24 = vpop.f32.mrf.mxu2  ;;  %v1520_v28 = vmul.f32 %v1487_v40, %v3622_v42 }
 0x1a0   : > { %v3678_v11 = vadd.f32 %v1589_v24, %v3438_v15 }
 0x1a2   : > { %1674 = vadd.xlane.f32.xlu2 %v3678_v11 }
 0x1a4   : > { %1639 = vmatmul.f32.gmra.mxu3 %v1517_v51 }
 0x1a7   : > { %v1592_v9 = vpop.f32.mrf.mxu2 }
 0x1a8   : > { %v3687_v43 = vadd.f32 %v1592_v9, %v3438_v15 }
 0x1aa   : > { %1676 = vadd.xlane.f32.xlu0 %v3687_v43 }
 0x1ac   : > { %1642 = vmatmul.f32.gmra.mxu3 %v1518_v27 }
 0x1af   : > { %v1595_v14 = vpop.f32.mrf.mxu2 }
 0x1b0   : > { %v3695_v52 = vadd.f32 %v1595_v14, %v3438_v15 }
 0x1b2   : > { %1678 = vadd.xlane.f32.xlu1 %v3695_v52 }
 0x1b4   : > { %1645 = vmatmul.f32.gmra.mxu3 %v1519_v21 }
 0x1b7   : > { %v1598_v39 = vpop.f32.mrf.mxu2 }
 0x1b8   : > { %v3700_v36 = vadd.f32 %v1598_v39, %v3438_v15 }
 0x1ba   : > { %1680 = vadd.xlane.f32.xlu2 %v3700_v36 }
 0x1bc   : > { %1648 = vmatmul.f32.gmra.mxu3 %v1520_v28 }
 0x1bd   : > { %v1653_v30 = vpop.xlane.xlu0 %1652 }
 0x1be   : > { %v1723_v41 = vmul.f32 %v3704_v25, %v1653_v30 }
 0x1bf   : > { %v1601_v34 = vpop.f32.mrf.mxu2 }
 0x1c0   : > { %v3708_v49 = vsub.f32 %v3446_v23, %v1723_v41  ;;  %v3711_v10 = vadd.f32 %v1601_v34, %v3438_v15 }
 0x1c2   : > { %1682 = vadd.xlane.f32.xlu0 %v3711_v10  ;;  %v1787_v42 = vmul.f32 %v3708_v49, %v3708_v49 }
 0x1c4   : > { %1819 = vadd.xlane.f32.xlu2 %v1787_v42 }
 0x1c5   : > { %v1655_v16 = vpop.xlane.xlu0 %1654 }
 0x1c6   : > { %v1724_v17 = vmul.f32 %v3704_v25, %v1655_v16 }
 0x1c7   : > { %v1604_v26 = vpop.f32.mrf.mxu2 }
 0x1c8   : > { %v3718_v57 = vsub.f32 %v3471_v53, %v1724_v17  ;;  %v3721_v24 = vadd.f32 %v1604_v26, %v3438_v15 }
 0x1ca   : > { %1684 = vadd.xlane.f32.xlu1 %v3721_v24  ;;  %v1788_v23 = vmul.f32 %v3718_v57, %v3718_v57 }
 0x1cc   : > { %1821 = vadd.xlane.f32.xlu0 %v1788_v23 }
 0x1cd   : > { %v1657_v46 = vpop.xlane.xlu1 %1656 }
 0x1ce   : > { %v1725_v60 = vmul.f32 %v3704_v25, %v1657_v46 }
 0x1cf   : > { %v1607_v48 = vpop.f32.mrf.mxu2 }
 0x1d0   : > { %v3728_v50 = vsub.f32 %v3488_v18, %v1725_v60  ;;  %v3731_v51 = vadd.f32 %v1607_v48, %v3438_v15 }
 0x1d2   : > { %1686 = vadd.xlane.f32.xlu2 %v3731_v51  ;;  %v1789_v53 = vmul.f32 %v3728_v50, %v3728_v50 }
 0x1d4   : > { %1823 = vadd.xlane.f32.xlu1 %v1789_v53 }
 0x1d5   : > { %v1659_v62 = vpop.xlane.xlu1 %1658 }
 0x1d6   : > { %v1726_v54 = vmul.f32 %v3704_v25, %v1659_v62 }
 0x1d7   : > { %v1610_v58 = vpop.f32.mrf.mxu2 }
 0x1d8   : > { %v3738_v38 = vsub.f32 %v3509_v44, %v1726_v54  ;;  %v3741_v35 = vadd.f32 %v1610_v58, %v3438_v15 }
 0x1da   : > { %1688 = vadd.xlane.f32.xlu0 %v3741_v35  ;;  %v1790_v18 = vmul.f32 %v3738_v38, %v3738_v38 }
 0x1dc   : > { %1825 = vadd.xlane.f32.xlu2 %v1790_v18 }
 0x1dd   : > { %v1661_v1 = vpop.xlane.xlu2 %1660 }
 0x1de   : > { %v1727_v31 = vmul.f32 %v3704_v25, %v1661_v1 }
 0x1df   : > { %v1613_v9 = vpop.f32.mrf.mxu2 }
 0x1e0   : > { %v3748_v0 = vadd.f32 %v1613_v9, %v3438_v15  ;;  %v3751_v22 = vsub.f32 %v3534_v7, %v1727_v31 }
 0x1e2   : > { %1690 = vadd.xlane.f32.xlu1 %v3748_v0  ;;  %v1791_v44 = vmul.f32 %v3751_v22, %v3751_v22 }
 0x1e4   : > { %1827 = vadd.xlane.f32.xlu0 %v1791_v44 }
 0x1e5   : > { %v1663_v29 = vpop.xlane.xlu2 %1662 }
 0x1e6   : > { %v1728_v4 = vmul.f32 %v3704_v25, %v1663_v29 }
 0x1e7   : > { %v1616_v27 = vpop.f32.mrf.mxu2 }
 0x1e8   : > { %v3758_v6 = vadd.f32 %v1616_v27, %v3438_v15  ;;  %v3761_v47 = vsub.f32 %v3553_v37, %v1728_v4 }
 0x1ea   : > { %1692 = vadd.xlane.f32.xlu2 %v3758_v6  ;;  %v1792_v7 = vmul.f32 %v3761_v47, %v3761_v47 }
 0x1ec   : > { %1829 = vadd.xlane.f32.xlu1 %v1792_v7 }
 0x1ed   : > { %v1665_v8 = vpop.xlane.xlu0 %1664 }
 0x1ee   : > { %v1729_v63 = vmul.f32 %v3704_v25, %v1665_v8 }
 0x1ef   : > { %v1619_v45 = vpop.f32.mrf.mxu2 }
 0x1f0   : > { %v3768_v12 = vsub.f32 %v3574_v2, %v1729_v63  ;;  %v3771_v14 = vadd.f32 %v1619_v45, %v3438_v15 }
 0x1f2   : > { %1694 = vadd.xlane.f32.xlu0 %v3771_v14  ;;  %v1793_v37 = vmul.f32 %v3768_v12, %v3768_v12 }
 0x1f4   : > { %1831 = vadd.xlane.f32.xlu2 %v1793_v37 }
 0x1f5   : > { %v1667_v13 = vpop.xlane.xlu1 %1666 }
 0x1f6   : > { %v1730_v55 = vmul.f32 %v3704_v25, %v1667_v13 }
 0x1f7   : > { %v1622_v20 = vpop.f32.mrf.mxu2 }
 0x1f8   : > { %v3778_v21 = vsub.f32 %v3600_v33, %v1730_v55  ;;  %v3781_v61 = vadd.f32 %v1622_v20, %v3438_v15 }
 0x1fa   : > { %1696 = vadd.xlane.f32.xlu1 %v3781_v61  ;;  %v1794_v2 = vmul.f32 %v3778_v21, %v3778_v21 }
 0x1fc   : > { %1833 = vadd.xlane.f32.xlu0 %v1794_v2 }
 0x1fd   : > { %v1669_v56 = vpop.xlane.xlu2 %1668 }
 0x1fe   : > { %v1731_v3 = vmul.f32 %v3704_v25, %v1669_v56 }
 0x1ff   : > { %v1625_v40 = vpop.f32.mrf.mxu3 }
 0x200   : > { %v3788_v39 = vadd.f32 %v1625_v40, %v3438_v15  ;;  %v3791_v5 = vsub.f32 %v3632_v59, %v1731_v3 }
 0x202   : > { %1698 = vadd.xlane.f32.xlu2 %v3788_v39  ;;  %v1795_v33 = vmul.f32 %v3791_v5, %v3791_v5 }
 0x204   : > { %1835 = vadd.xlane.f32.xlu1 %v1795_v33 }
 0x205   : > { %v1671_v28 = vpop.xlane.xlu0 %1670 }
 0x206   : > { %v1732_v30 = vmul.f32 %v3704_v25, %v1671_v28 }
 0x207   : > { %v1628_v41 = vpop.f32.mrf.mxu3 }
 0x208   : > { %v3798_v34 = vadd.f32 %v1628_v41, %v3438_v15  ;;  %v3801_v42 = vsub.f32 %v3655_v19, %v1732_v30 }
 0x20a   : > { %1700 = vadd.xlane.f32.xlu0 %v3798_v34  ;;  %v1796_v59 = vmul.f32 %v3801_v42, %v3801_v42 }
 0x20c   : > { %1837 = vadd.xlane.f32.xlu2 %v1796_v59 }
 0x20d   : > { %v1673_v16 = vpop.xlane.xlu1 %1672 }
 0x20e   : > { %v1733_v17 = vmul.f32 %v3704_v25, %v1673_v16 }
 0x20f   : > { %v1631_v26 = vpop.f32.mrf.mxu3 }
 0x210   : > { %v3808_v23 = vadd.f32 %v1631_v26, %v3438_v15  ;;  %v3811_v46 = vsub.f32 %v3668_v32, %v1733_v17 }
 0x212   : > { %1702 = vadd.xlane.f32.xlu1 %v3808_v23  ;;  %v1797_v19 = vmul.f32 %v3811_v46, %v3811_v46 }
 0x214   : > { %1839 = vadd.xlane.f32.xlu0 %v1797_v19 }
 0x215   : > { %v1675_v60 = vpop.xlane.xlu2 %1674 }
 0x216   : > { %v1734_v48 = vmul.f32 %v3704_v25, %v1675_v60 }
 0x217   : > { %v1634_v53 = vpop.f32.mrf.mxu3 }
 0x218   : > { %v3818_v62 = vadd.f32 %v1634_v53, %v3438_v15  ;;  %v3821_v54 = vsub.f32 %v3678_v11, %v1734_v48 }
 0x21a   : > { %1704 = vadd.xlane.f32.xlu2 %v3818_v62  ;;  %v1798_v32 = vmul.f32 %v3821_v54, %v3821_v54 }
 0x21c   : > { %1841 = vadd.xlane.f32.xlu1 %v1798_v32 }
 0x21d   : > { %v1677_v58 = vpop.xlane.xlu0 %1676 }
 0x21e   : > { %v1735_v18 = vmul.f32 %v3704_v25, %v1677_v58 }
 0x21f   : > { %v1637_v1 = vpop.f32.mrf.mxu3 }
 0x220   : > { %v3828_v31 = vadd.f32 %v1637_v1, %v3438_v15  ;;  %v3831_v9 = vsub.f32 %v3687_v43, %v1735_v18 }
 0x222   : > { %1706 = vadd.xlane.f32.xlu0 %v3828_v31  ;;  %v1799_v11 = vmul.f32 %v3831_v9, %v3831_v9 }
 0x224   : > { %1843 = vadd.xlane.f32.xlu2 %v1799_v11 }
 0x225   : > { %v1679_v44 = vpop.xlane.xlu1 %1678 }
 0x226   : > { %v1736_v29 = vmul.f32 %v3704_v25, %v1679_v44 }
 0x227   : > { %v1640_v4 = vpop.f32.mrf.mxu3 }
 0x228   : > { %v3838_v27 = vadd.f32 %v1640_v4, %v3438_v15  ;;  %v3841_v7 = vsub.f32 %v3695_v52, %v1736_v29 }
 0x22a   : > { %1708 = vadd.xlane.f32.xlu1 %v3838_v27  ;;  %v1800_v43 = vmul.f32 %v3841_v7, %v3841_v7 }
 0x22c   : > { %1845 = vadd.xlane.f32.xlu0 %v1800_v43 }
 0x22d   : > { %v1681_v63 = vpop.xlane.xlu2 %1680 }
 0x22e   : > { %v1737_v41 = vmul.f32 %v3704_v25, %v1681_v63  ;;  %v2878_v63 = vld [vmem:[%s4207_s6] sm:$0x7] }
 0x22f   : > { %v1643_v8 = vpop.f32.mrf.mxu3 }
 0x230   : > { %v3847_v45 = vadd.f32 %v1643_v8, %v3438_v15  ;;  %v3874_v48 = vsub.f32 %v3700_v36, %v1737_v41 }
 0x232   : > { %1710 = vadd.xlane.f32.xlu2 %v3847_v45  ;;  %v1801_v1 = vmul.f32 %v3874_v48, %v3874_v48 }
 0x235   : > { %v1683_v37 = vpop.xlane.xlu0 %1682 }
 0x236   : > { %v1738_v13 = vmul.f32 %v3704_v25, %v1683_v37  ;;  %v3887_v37 = vperm.slane %v2878_v63, 1 }
 0x237   : > { %v1646_v55 = vpop.f32.mrf.mxu3  ;;  %v1820_v20 = vpop.xlane.xlu2 %1819 }
 0x238   : > { %v3852_v52 = vadd.f32 %v1646_v55, %v3438_v15  ;;  %v3855_v2 = vsub.f32 %v3711_v10, %v1738_v13  ;;  %v1883_v56 = vmul.f32 %v1820_v20, %v3704_v25 }
 0x23a   : > { %1712 = vadd.xlane.f32.xlu0 %v3852_v52  ;;  %v1915_v3 = vadd.f32 1e-05, %v1883_v56  ;;  %v1802_v40 = vmul.f32 %v3855_v2, %v3855_v2  ;;  %v3889_v56 = vperm.slane %v2878_v63, 2 }
 0x23c   : > { %2813 = vrsqrt.f32 %v1915_v3  ;;  %1849 = vadd.xlane.f32.xlu2 %v1802_v40  ;;  %vm1953_vm4 = vweird.f32 %v1915_v3 }
 0x23d   : > { %v1685_v33 = vpop.xlane.xlu1 %1684 }
 0x23e   : > { %v1739_v28 = vmul.f32 %v3704_v25, %v1685_v33 }
 0x23f   : > { %v1649_v30 = vpop.f32.mrf.mxu3  ;;  %v1822_v10 = vpop.xlane.xlu0 %1821 }
 0x240   : > { %v3864_v59 = vadd.f32 %v1649_v30, %v3438_v15  ;;  %v3867_v16 = vsub.f32 %v3721_v24, %v1739_v28  ;;  %v1884_v17 = vmul.f32 %v1822_v10, %v3704_v25 }
 0x242   : > { %1714 = vadd.xlane.f32.xlu1 %v3864_v59  ;;  %v2814_v26 = vpop.eup %2813  ;;  %v1916_v19 = vadd.f32 1e-05, %v1884_v17  ;;  %v1803_v60 = vmul.f32 %v3867_v16, %v3867_v16 }
 0x243   : > { %v1948_v53 = vmul.f32 %v2814_v26, %v1915_v3  ;;  %vm1954_vm3 = vweird.f32 %v2814_v26 }
 0x244   : > { %2815 = vrsqrt.f32 %v1916_v19  ;;  %1851 = vadd.xlane.f32.xlu0 %v1803_v60  ;;  %vm1955_vm5 = vmor %vm1953_vm4, %vm1954_vm3  ;;  %vm1963_vm7 = vweird.f32 %v1916_v19 }
 0x245   : > { %v1949_v15 = vmul.f32 %v2814_v26, %v1948_v53  ;;  %v1687_v32 = vpop.xlane.xlu2 %1686 }
 0x246   : > { %v1740_v58 = vmul.f32 %v3704_v25, %v1687_v32 }
 0x247   : > { %v1950_v24 = vmul.f32 0.5, %v1949_v15  ;;  %v1824_v18 = vpop.xlane.xlu1 %1823 }
 0x248   : > { %v1885_v11 = vmul.f32 %v1824_v18, %v3704_v25  ;;  %v3882_v8 = vsub.f32 %v3731_v51, %v1740_v58 }
 0x249   : > { %v1951_v44 = vsub.f32 1.5, %v1950_v24 }
 0x24a   : > { %1847 = vadd.xlane.f32.xlu1 %v1801_v1  ;;  %v2816_v36 = vpop.eup %2815  ;;  %v1917_v29 = vadd.f32 1e-05, %v1885_v11  ;;  %v1804_v28 = vmul.f32 %v3882_v8, %v3882_v8 }
 0x24b   : > { %v1952_v4 = vmul.f32 %v2814_v26, %v1951_v44  ;;  %v1958_v43 = vmul.f32 %v2816_v36, %v1916_v19  ;;  %vm1964_vm6 = vweird.f32 %v2816_v36 }
 0x24c   : > { %2817 = vrsqrt.f32 %v1917_v29  ;;  %vm1965_vm8 = vmor %vm1963_vm7, %vm1964_vm6  ;;  %vm1973_vm0 = vweird.f32 %v1917_v29 }
 0x24d   : > { %v1956_v13 = vsel %vm1955_vm5, %v2814_v26, %v1952_v4  ;;  %v1959_v55 = vmul.f32 %v2816_v36, %v1958_v43  ;;  %v1689_v20 = vpop.xlane.xlu0 %1688 }
 0x24e   : > { %v2267_v3 = vmul.f32 %v1956_v13, %v3708_v49  ;;  %v1741_v51 = vmul.f32 %v3704_v25, %v1689_v20 }
 0x24f   : > { %v1960_v40 = vmul.f32 0.5, %v1959_v55  ;;  %v1826_v33 = vpop.xlane.xlu2 %1825 }
 0x250   : > { %v2300_v30 = vmul.f32 %v3887_v37, %v2267_v3  ;;  %v3899_v41 = vsub.f32 %v3741_v35, %v1741_v51  ;;  %v1886_v10 = vmul.f32 %v1826_v33, %v3704_v25 }
 0x251   : > { %v1961_v17 = vsub.f32 1.5, %v1960_v40 }
 0x252   : > { %1853 = vadd.xlane.f32.xlu1 %v1804_v28  ;;  %v2818_v26 = vpop.eup %2817  ;;  %v2333_v49 = vadd.f32 %v3889_v56, %v2300_v30  ;;  %v1918_v60 = vadd.f32 1e-05, %v1886_v10  ;;  %v1805_v53 = vmul.f32 %v3899_v41, %v3899_v41 }
 0x253   : > { %v1962_v15 = vmul.f32 %v2816_v36, %v1961_v17  ;;  %v1968_v32 = vmul.f32 %v2818_v26, %v1917_v29  ;;  %vm1974_vm9 = vweird.f32 %v2818_v26 }
 0x254   : > { %2365 = vst [vmem:[%s3905_s8] sm:$0xff] %v2333_v49  ;;  %2819 = vrsqrt.f32 %v1918_v60  ;;  %1855 = vadd.xlane.f32.xlu2 %v1805_v53  ;;  %vm1975_vm10 = vmor %vm1973_vm0, %vm1974_vm9  ;;  %vm1983_vm12 = vweird.f32 %v1918_v60 }
 0x255   : > { %v1966_v35 = vsel %vm1965_vm8, %v2816_v36, %v1962_v15  ;;  %v1969_v24 = vmul.f32 %v2818_v26, %v1968_v32  ;;  %v1691_v58 = vpop.xlane.xlu1 %1690 }
 0x256   : > { %v2268_v18 = vmul.f32 %v1966_v35, %v3718_v57  ;;  %v1742_v1 = vmul.f32 %v3704_v25, %v1691_v58 }
 0x257   : > { %v1970_v11 = vmul.f32 0.5, %v1969_v24  ;;  %v1828_v4 = vpop.xlane.xlu0 %1827 }
 0x258   : > { %v2301_v44 = vmul.f32 %v3887_v37, %v2268_v18  ;;  %v3912_v19 = vsub.f32 %v3748_v0, %v1742_v1  ;;  %v1887_v63 = vmul.f32 %v1828_v4, %v3704_v25 }
 0x259   : > { %v1971_v43 = vsub.f32 1.5, %v1970_v11 }
 0x25a   : > { %v2820_v13 = vpop.eup %2819  ;;  %v2334_v36 = vadd.f32 %v3889_v56, %v2301_v44  ;;  %v1806_v57 = vmul.f32 %v3912_v19, %v3912_v19  ;;  %v1919_v3 = vadd.f32 1e-05, %v1887_v63 }
 0x25b   : > { %v1972_v55 = vmul.f32 %v2818_v26, %v1971_v43  ;;  %v1978_v20 = vmul.f32 %v2820_v13, %v1918_v60  ;;  %vm1984_vm11 = vweird.f32 %v2820_v13 }
 0x25c   : > { %2366 = vst [vmem:[%s3905_s8 + $0x8] sm:$0xff] %v2334_v36  ;;  %1857 = vadd.xlane.f32.xlu0 %v1806_v57  ;;  %2821 = vrsqrt.f32 %v1919_v3  ;;  %vm1985_vm13 = vmor %vm1983_vm12, %vm1984_vm11  ;;  %vm1993_vm15 = vweird.f32 %v1919_v3 }
 0x25d   : > { %v1976_v0 = vsel %vm1975_vm10, %v2818_v26, %v1972_v55  ;;  %v1979_v51 = vmul.f32 %v2820_v13, %v1978_v20  ;;  %v1693_v40 = vpop.xlane.xlu2 %1692 }
 0x25e   : > { %v2269_v33 = vmul.f32 %v1976_v0, %v3728_v50  ;;  %v1743_v28 = vmul.f32 %v3704_v25, %v1693_v40 }
 0x25f   : > { %v1980_v30 = vmul.f32 0.5, %v1979_v51  ;;  %v1830_v29 = vpop.xlane.xlu1 %1829 }
 0x260   : > { %v2302_v10 = vmul.f32 %v3887_v37, %v2269_v33  ;;  %v3923_v17 = vsub.f32 %v3758_v6, %v1743_v28  ;;  %v1888_v53 = vmul.f32 %v1830_v29, %v3704_v25 }
 0x261   : > { %v1981_v49 = vsub.f32 1.5, %v1980_v30 }
 0x262   : > { %v2335_v26 = vadd.f32 %v3889_v56, %v2302_v10  ;;  %v1807_v15 = vmul.f32 %v3923_v17, %v3923_v17  ;;  %v2822_v32 = vpop.eup %2821  ;;  %v1920_v35 = vadd.f32 1e-05, %v1888_v53 }
 0x263   : > { %v1982_v50 = vmul.f32 %v2820_v13, %v1981_v49  ;;  %v1988_v24 = vmul.f32 %v2822_v32, %v1919_v3  ;;  %vm1994_vm14 = vweird.f32 %v2822_v32 }
 0x264   : > { %2367 = vst [vmem:[%s3905_s8 + $0x10] sm:$0xff] %v2335_v26  ;;  %1859 = vadd.xlane.f32.xlu1 %v1807_v15  ;;  %2823 = vrsqrt.f32 %v1920_v35  ;;  %vm1995_vm1 = vmor %vm1993_vm15, %vm1994_vm14  ;;  %vm2003_vm3 = vweird.f32 %v1920_v35 }
 0x265   : > { %v1986_v6 = vsel %vm1985_vm13, %v2820_v13, %v1982_v50  ;;  %v1695_v58 = vpop.xlane.xlu0 %1694  ;;  %v1989_v1 = vmul.f32 %v2822_v32, %v1988_v24 }
 0x266   : > { %v2270_v18 = vmul.f32 %v1986_v6, %v3738_v38  ;;  %v1744_v11 = vmul.f32 %v3704_v25, %v1695_v58 }
 0x267   : > { %v1832_v44 = vpop.xlane.xlu2 %1831  ;;  %v1990_v43 = vmul.f32 0.5, %v1989_v1 }
 0x268   : > { %v2303_v4 = vmul.f32 %v3887_v37, %v2270_v18  ;;  %v3934_v60 = vsub.f32 %v3771_v14, %v1744_v11  ;;  %v1889_v63 = vmul.f32 %v1832_v44, %v3704_v25 }
 0x269   : > { %v1991_v36 = vsub.f32 1.5, %v1990_v43 }
 0x26a   : > { %v2336_v13 = vadd.f32 %v3889_v56, %v2303_v4  ;;  %v1921_v57 = vadd.f32 1e-05, %v1889_v63  ;;  %v1808_v38 = vmul.f32 %v3934_v60, %v3934_v60  ;;  %v2824_v55 = vpop.eup %2823 }
 0x26b   : > { %v1992_v20 = vmul.f32 %v2822_v32, %v1991_v36  ;;  %v1998_v0 = vmul.f32 %v2824_v55, %v1920_v35  ;;  %vm2004_vm2 = vweird.f32 %v2824_v55 }
 0x26c   : > { %2368 = vst [vmem:[%s3905_s8 + $0x18] sm:$0xff] %v2336_v13  ;;  %2825 = vrsqrt.f32 %v1921_v57  ;;  %1861 = vadd.xlane.f32.xlu2 %v1808_v38  ;;  %vm2005_vm4 = vmor %vm2003_vm3, %vm2004_vm2  ;;  %vm2013_vm6 = vweird.f32 %v1921_v57 }
 0x26d   : > { %v1697_v14 = vpop.xlane.xlu1 %1696  ;;  %v1996_v51 = vsel %vm1995_vm1, %v2822_v32, %v1992_v20  ;;  %v1999_v40 = vmul.f32 %v2824_v55, %v1998_v0 }
 0x26e   : > { %v1745_v33 = vmul.f32 %v3704_v25, %v1697_v14  ;;  %v2271_v28 = vmul.f32 %v1996_v51, %v3751_v22 }
 0x26f   : > { %v1834_v30 = vpop.xlane.xlu0 %1833  ;;  %v2000_v10 = vmul.f32 0.5, %v1999_v40 }
 0x270   : > { %v3944_v29 = vsub.f32 %v3781_v61, %v1745_v33  ;;  %v1890_v49 = vmul.f32 %v1834_v30, %v3704_v25  ;;  %v2304_v3 = vmul.f32 %v3887_v37, %v2271_v28 }
 0x271   : > { %v2001_v26 = vsub.f32 1.5, %v2000_v10 }
 0x272   : > { %v2826_v53 = vpop.eup %2825  ;;  %v1922_v15 = vadd.f32 1e-05, %v1890_v49  ;;  %v1809_v32 = vmul.f32 %v3944_v29, %v3944_v29  ;;  %v2337_v50 = vadd.f32 %v3889_v56, %v2304_v3 }
 0x273   : > { %v2008_v22 = vmul.f32 %v2826_v53, %v1921_v57  ;;  %v2002_v24 = vmul.f32 %v2824_v55, %v2001_v26  ;;  %vm2014_vm5 = vweird.f32 %v2826_v53 }
 0x274   : > { %2827 = vrsqrt.f32 %v1922_v15  ;;  %1863 = vadd.xlane.f32.xlu0 %v1809_v32  ;;  %2369 = vst [vmem:[%s3905_s8 + $0x20] sm:$0xff] %v2337_v50  ;;  %vm2015_vm7 = vmor %vm2013_vm6, %vm2014_vm5  ;;  %vm2023_vm9 = vweird.f32 %v1922_v15 }
 0x275   : > { %v1699_v61 = vpop.xlane.xlu2 %1698  ;;  %v2009_v6 = vmul.f32 %v2826_v53, %v2008_v22  ;;  %v2006_v18 = vsel %vm2005_vm4, %v2824_v55, %v2002_v24 }
 0x276   : > { %v1746_v58 = vmul.f32 %v3704_v25, %v1699_v61  ;;  %v2272_v1 = vmul.f32 %v2006_v18, %v3761_v47 }
 0x277   : > { %v2010_v11 = vmul.f32 0.5, %v2009_v6  ;;  %v1836_v4 = vpop.xlane.xlu1 %1835 }
 0x278   : > { %v3955_v44 = vsub.f32 %v3788_v39, %v1746_v58  ;;  %v1891_v43 = vmul.f32 %v1836_v4, %v3704_v25  ;;  %v2305_v35 = vmul.f32 %v3887_v37, %v2272_v1 }
 0x279   : > { %v2011_v63 = vsub.f32 1.5, %v2010_v11 }
 0x27a   : > { %v1810_v13 = vmul.f32 %v3955_v44, %v3955_v44  ;;  %v2828_v36 = vpop.eup %2827  ;;  %v1923_v38 = vadd.f32 1e-05, %v1891_v43  ;;  %v2338_v55 = vadd.f32 %v3889_v56, %v2305_v35 }
 0x27b   : > { %v2012_v47 = vmul.f32 %v2826_v53, %v2011_v63  ;;  %v2018_v20 = vmul.f32 %v2828_v36, %v1922_v15  ;;  %vm2024_vm8 = vweird.f32 %v2828_v36 }
 0x27c   : > { %1865 = vadd.xlane.f32.xlu1 %v1810_v13  ;;  %2829 = vrsqrt.f32 %v1923_v38  ;;  %2370 = vst [vmem:[%s3905_s8 + $0x28] sm:$0xff] %v2338_v55  ;;  %vm2025_vm0 = vmor %vm2023_vm9, %vm2024_vm8  ;;  %vm2033_vm11 = vweird.f32 %v1923_v38 }
 0x27d   : > { %v1701_v39 = vpop.xlane.xlu0 %1700  ;;  %v2016_v0 = vsel %vm2015_vm7, %v2826_v53, %v2012_v47  ;;  %v2019_v14 = vmul.f32 %v2828_v36, %v2018_v20 }
 0x27e   : > { %v1747_v51 = vmul.f32 %v3704_v25, %v1701_v39  ;;  %v2273_v40 = vmul.f32 %v2016_v0, %v3768_v12 }
 0x27f   : > { %v2020_v33 = vmul.f32 0.5, %v2019_v14  ;;  %v1838_v30 = vpop.xlane.xlu2 %1837 }
 0x280   : > { %v3966_v28 = vsub.f32 %v3798_v34, %v1747_v51  ;;  %v2306_v57 = vmul.f32 %v3887_v37, %v2273_v40  ;;  %v1892_v10 = vmul.f32 %v1838_v30, %v3704_v25 }
 0x281   : > { %v2021_v49 = vsub.f32 1.5, %v2020_v33 }
 0x282   : > { %v1811_v3 = vmul.f32 %v3966_v28, %v3966_v28  ;;  %v2830_v53 = vpop.eup %2829  ;;  %v2339_v26 = vadd.f32 %v3889_v56, %v2306_v57  ;;  %v1924_v32 = vadd.f32 1e-05, %v1892_v10 }
 0x283   : > { %v2022_v12 = vmul.f32 %v2828_v36, %v2021_v49  ;;  %v2028_v50 = vmul.f32 %v2830_v53, %v1923_v38  ;;  %vm2034_vm10 = vweird.f32 %v2830_v53 }
 0x284   : > { %1867 = vadd.xlane.f32.xlu2 %v1811_v3  ;;  %2371 = vst [vmem:[%s3905_s8 + $0x30] sm:$0xff] %v2339_v26  ;;  %2831 = vrsqrt.f32 %v1924_v32  ;;  %vm2035_vm12 = vmor %vm2033_vm11, %vm2034_vm10  ;;  %vm2043_vm14 = vweird.f32 %v1924_v32 }
 0x285   : > { %v1703_v34 = vpop.xlane.xlu1 %1702  ;;  %v2026_v22 = vsel %vm2025_vm0, %v2828_v36, %v2022_v12  ;;  %v2029_v24 = vmul.f32 %v2830_v53, %v2028_v50 }
 0x286   : > { %v1748_v61 = vmul.f32 %v3704_v25, %v1703_v34  ;;  %v2274_v6 = vmul.f32 %v2026_v22, %v3778_v21 }
 0x287   : > { %v2030_v58 = vmul.f32 0.5, %v2029_v24  ;;  %v1840_v1 = vpop.xlane.xlu0 %1839 }
 0x288   : > { %v3977_v18 = vsub.f32 %v3808_v23, %v1748_v61  ;;  %v2307_v15 = vmul.f32 %v3887_v37, %v2274_v6  ;;  %v1893_v11 = vmul.f32 %v1840_v1, %v3704_v25 }
 0x289   : > { %v2031_v4 = vsub.f32 1.5, %v2030_v58 }
 0x28a   : > { %v1812_v43 = vmul.f32 %v3977_v18, %v3977_v18  ;;  %v2832_v35 = vpop.eup %2831  ;;  %v2340_v63 = vadd.f32 %v3889_v56, %v2307_v15  ;;  %v1925_v13 = vadd.f32 1e-05, %v1893_v11 }
 0x28b   : > { %v2032_v21 = vmul.f32 %v2830_v53, %v2031_v4  ;;  %v2038_v36 = vmul.f32 %v2832_v35, %v1924_v32  ;;  %vm2044_vm13 = vweird.f32 %v2832_v35 }
 0x28c   : > { %1869 = vadd.xlane.f32.xlu0 %v1812_v43  ;;  %2372 = vst [vmem:[%s3905_s8 + $0x38] sm:$0xff] %v2340_v63  ;;  %2833 = vrsqrt.f32 %v1925_v13  ;;  %vm2045_vm15 = vmor %vm2043_vm14, %vm2044_vm13  ;;  %vm2053_vm2 = vweird.f32 %v1925_v13 }
 0x28d   : > { %v1705_v23 = vpop.xlane.xlu2 %1704  ;;  %v2036_v55 = vsel %vm2035_vm12, %v2830_v53, %v2032_v21  ;;  %v2039_v47 = vmul.f32 %v2832_v35, %v2038_v36 }
 0x28e   : > { %v1749_v20 = vmul.f32 %v3704_v25, %v1705_v23  ;;  %v2275_v39 = vmul.f32 %v2036_v55, %v3791_v5 }
 0x28f   : > { %v2040_v0 = vmul.f32 0.5, %v2039_v47  ;;  %v1842_v51 = vpop.xlane.xlu1 %1841 }
 0x290   : > { %v3988_v14 = vsub.f32 %v3818_v62, %v1749_v20  ;;  %v2308_v38 = vmul.f32 %v3887_v37, %v2275_v39  ;;  %v1894_v40 = vmul.f32 %v1842_v51, %v3704_v25 }
 0x291   : > { %v2041_v33 = vsub.f32 1.5, %v2040_v0 }
 0x292   : > { %v1813_v30 = vmul.f32 %v3988_v14, %v3988_v14  ;;  %v2834_v57 = vpop.eup %2833  ;;  %v2341_v10 = vadd.f32 %v3889_v56, %v2308_v38  ;;  %v1926_v49 = vadd.f32 1e-05, %v1894_v40 }
 0x293   : > { %v2042_v5 = vmul.f32 %v2832_v35, %v2041_v33  ;;  %v2048_v3 = vmul.f32 %v2834_v57, %v1925_v13  ;;  %vm2054_vm1 = vweird.f32 %v2834_v57 }
 0x294   : > { %1871 = vadd.xlane.f32.xlu1 %v1813_v30  ;;  %2373 = vst [vmem:[%s3905_s8 + $0x40] sm:$0xff] %v2341_v10  ;;  %2835 = vrsqrt.f32 %v1926_v49  ;;  %vm2055_vm3 = vmor %vm2053_vm2, %vm2054_vm1  ;;  %vm2063_vm5 = vweird.f32 %v1926_v49 }
 0x295   : > { %v1707_v62 = vpop.xlane.xlu0 %1706  ;;  %v2046_v53 = vsel %vm2045_vm15, %v2832_v35, %v2042_v5  ;;  %v2049_v26 = vmul.f32 %v2834_v57, %v2048_v3 }
 0x296   : > { %v1750_v12 = vmul.f32 %v3704_v25, %v1707_v62  ;;  %v2276_v50 = vmul.f32 %v2046_v53, %v3801_v42 }
 0x297   : > { %v2050_v34 = vmul.f32 0.5, %v2049_v26  ;;  %v1844_v24 = vpop.xlane.xlu2 %1843 }
 0x298   : > { %v3999_v22 = vsub.f32 %v3828_v31, %v1750_v12  ;;  %v2309_v32 = vmul.f32 %v3887_v37, %v2276_v50  ;;  %v1895_v61 = vmul.f32 %v1844_v24, %v3704_v25 }
 0x299   : > { %v2051_v6 = vsub.f32 1.5, %v2050_v34 }
 0x29a   : > { %v1814_v58 = vmul.f32 %v3999_v22, %v3999_v22  ;;  %v2836_v1 = vpop.eup %2835  ;;  %v2342_v15 = vadd.f32 %v3889_v56, %v2309_v32  ;;  %v1927_v11 = vadd.f32 1e-05, %v1895_v61 }
 0x29b   : > { %v2052_v42 = vmul.f32 %v2834_v57, %v2051_v6  ;;  %v2058_v4 = vmul.f32 %v2836_v1, %v1926_v49  ;;  %vm2064_vm4 = vweird.f32 %v2836_v1 }
 0x29c   : > { %1873 = vadd.xlane.f32.xlu2 %v1814_v58  ;;  %2374 = vst [vmem:[%s3905_s8 + $0x48] sm:$0xff] %v2342_v15  ;;  %2837 = vrsqrt.f32 %v1927_v11  ;;  %vm2065_vm6 = vmor %vm2063_vm5, %vm2064_vm4  ;;  %vm2073_vm8 = vweird.f32 %v1927_v11 }
 0x29d   : > { %v1709_v31 = vpop.xlane.xlu1 %1708  ;;  %v2056_v43 = vsel %vm2055_vm3, %v2834_v57, %v2052_v42  ;;  %v2059_v35 = vmul.f32 %v2836_v1, %v2058_v4 }
 0x29e   : > { %v1751_v63 = vmul.f32 %v3704_v25, %v1709_v31  ;;  %v2277_v21 = vmul.f32 %v2056_v43, %v3811_v46 }
 0x29f   : > { %v2060_v36 = vmul.f32 0.5, %v2059_v35  ;;  %v1846_v55 = vpop.xlane.xlu0 %1845 }
 0x2a0   : > { %v4010_v23 = vsub.f32 %v3838_v27, %v1751_v63  ;;  %v2310_v13 = vmul.f32 %v3887_v37, %v2277_v21  ;;  %v1896_v47 = vmul.f32 %v1846_v55, %v3704_v25 }
 0x2a1   : > { %v2061_v20 = vsub.f32 1.5, %v2060_v36 }
 0x2a2   : > { %v1815_v39 = vmul.f32 %v4010_v23, %v4010_v23  ;;  %v2838_v0 = vpop.eup %2837  ;;  %v2343_v51 = vadd.f32 %v3889_v56, %v2310_v13  ;;  %v1928_v38 = vadd.f32 1e-05, %v1896_v47 }
 0x2a3   : > { %v2062_v46 = vmul.f32 %v2836_v1, %v2061_v20  ;;  %v2068_v40 = vmul.f32 %v2838_v0, %v1927_v11  ;;  %vm2074_vm7 = vweird.f32 %v2838_v0 }
 0x2a4   : > { %1875 = vadd.xlane.f32.xlu0 %v1815_v39  ;;  %2375 = vst [vmem:[%s3905_s8 + $0x50] sm:$0xff] %v2343_v51  ;;  %2839 = vrsqrt.f32 %v1928_v38  ;;  %vm2075_vm9 = vmor %vm2073_vm8, %vm2074_vm7  ;;  %vm2083_vm10 = vweird.f32 %v1928_v38 }
 0x2a5   : > { %v1711_v27 = vpop.xlane.xlu2 %1710  ;;  %v2066_v33 = vsel %vm2065_vm6, %v2836_v1, %v2062_v46  ;;  %v2069_v30 = vmul.f32 %v2838_v0, %v2068_v40 }
 0x2a6   : > { %v1752_v57 = vmul.f32 %v3704_v25, %v1711_v27  ;;  %v2278_v10 = vmul.f32 %v2066_v33, %v3821_v54 }
 0x2a7   : > { %v2070_v5 = vmul.f32 0.5, %v2069_v30 }
 0x2a8   : > { %v4021_v3 = vsub.f32 %v3847_v45, %v1752_v57  ;;  %v2311_v62 = vmul.f32 %v3887_v37, %v2278_v10 }
 0x2a9   : > { %v2071_v49 = vsub.f32 1.5, %v2070_v5 }
 0x2aa   : > { %v1816_v53 = vmul.f32 %v4021_v3, %v4021_v3  ;;  %v2840_v26 = vpop.eup %2839  ;;  %v2344_v12 = vadd.f32 %v3889_v56, %v2311_v62 }
 0x2ab   : > { %v2072_v50 = vmul.f32 %v2838_v0, %v2071_v49  ;;  %v2078_v34 = vmul.f32 %v2840_v26, %v1928_v38  ;;  %vm2084_vm0 = vweird.f32 %v2840_v26 }
 0x2ac   : > { %1877 = vadd.xlane.f32.xlu1 %v1816_v53  ;;  %2376 = vst [vmem:[%s3905_s8 + $0x58] sm:$0xff] %v2344_v12  ;;  %vm2085_vm11 = vmor %vm2083_vm10, %vm2084_vm0 }
 0x2ad   : > { %v1713_v54 = vpop.xlane.xlu0 %1712  ;;  %v2076_v24 = vsel %vm2075_vm9, %v2838_v0, %v2072_v50  ;;  %v2079_v45 = vmul.f32 %v2840_v26, %v2078_v34 }
 0x2ae   : > { %v1753_v32 = vmul.f32 %v3704_v25, %v1713_v54  ;;  %v2279_v61 = vmul.f32 %v2076_v24, %v3831_v9 }
 0x2af   : > { %v2080_v6 = vmul.f32 0.5, %v2079_v45  ;;  %v1850_v1 = vpop.xlane.xlu2 %1849 }
 0x2b0   : > { %v4031_v58 = vsub.f32 %v3852_v52, %v1753_v32  ;;  %v2312_v15 = vmul.f32 %v3887_v37, %v2279_v61  ;;  %v1898_v11 = vmul.f32 %v1850_v1, %v3704_v25 }
 0x2b1   : > { %v2081_v42 = vsub.f32 1.5, %v2080_v6 }
 0x2b2   : > { %v1817_v4 = vmul.f32 %v4031_v58, %v4031_v58  ;;  %v2345_v31 = vadd.f32 %v3889_v56, %v2312_v15  ;;  %v1930_v43 = vadd.f32 1e-05, %v1898_v11 }
 0x2b3   : > { %v2082_v35 = vmul.f32 %v2840_v26, %v2081_v42 }
 0x2b4   : > { %1879 = vadd.xlane.f32.xlu2 %v1817_v4  ;;  %2377 = vst [vmem:[%s3905_s8 + $0x60] sm:$0xff] %v2345_v31  ;;  %2841 = vrsqrt.f32 %v1930_v43  ;;  %vm2103_vm13 = vweird.f32 %v1930_v43 }
 0x2b5   : > { %v1715_v9 = vpop.xlane.xlu1 %1714  ;;  %v2086_v52 = vsel %vm2085_vm11, %v2840_v26, %v2082_v35 }
 0x2b6   : > { %v1754_v63 = vmul.f32 %v3704_v25, %v1715_v9  ;;  %v2280_v21 = vmul.f32 %v2086_v52, %v3841_v7 }
 0x2b7   : > { %v1852_v55 = vpop.xlane.xlu0 %1851 }
 0x2b8   : > { %v4042_v36 = vsub.f32 %v3864_v59, %v1754_v63  ;;  %v2313_v13 = vmul.f32 %v3887_v37, %v2280_v21  ;;  %v1899_v47 = vmul.f32 %v1852_v55, %v3704_v25 }
 0x2ba   : > { %v1818_v20 = vmul.f32 %v4042_v36, %v4042_v36  ;;  %v2842_v39 = vpop.eup %2841  ;;  %v2346_v0 = vadd.f32 %v3889_v56, %v2313_v13  ;;  %v1931_v51 = vadd.f32 1e-05, %v1899_v47 }
 0x2bb   : > { %v2098_v38 = vmul.f32 %v2842_v39, %v1930_v43  ;;  %vm2104_vm12 = vweird.f32 %v2842_v39 }
 0x2bc   : > { %1881 = vadd.xlane.f32.xlu0 %v1818_v20  ;;  %2378 = vst [vmem:[%s3905_s8 + $0x68] sm:$0xff] %v2346_v0  ;;  %2843 = vrsqrt.f32 %v1931_v51  ;;  %vm2105_vm14 = vmor %vm2103_vm13, %vm2104_vm12  ;;  %vm2113_vm1 = vweird.f32 %v1931_v51 }
 0x2bd   : > { %v1848_v7 = vpop.xlane.xlu1 %1847  ;;  %v2099_v46 = vmul.f32 %v2842_v39, %v2098_v38 }
 0x2be   : > { %v1897_v59 = vmul.f32 %v1848_v7, %v3704_v25 }
 0x2bf   : > { %v2100_v40 = vmul.f32 0.5, %v2099_v46 }
 0x2c0   : > { %v1929_v27 = vadd.f32 1e-05, %v1897_v59 }
 0x2c1   : > { %v2101_v33 = vsub.f32 1.5, %v2100_v40 }
 0x2c2   : > { %2845 = vrsqrt.f32 %v1929_v27  ;;  %v2844_v30 = vpop.eup %2843  ;;  %vm2093_vm4 = vweird.f32 %v1929_v27 }
 0x2c3   : > { %v2102_v57 = vmul.f32 %v2842_v39, %v2101_v33  ;;  %v2108_v10 = vmul.f32 %v2844_v30, %v1931_v51  ;;  %vm2114_vm15 = vweird.f32 %v2844_v30 }
 0x2c4   : > { %vm2115_vm2 = vmor %vm2113_vm1, %vm2114_vm15 }
 0x2c5   : > { %v1854_v5 = vpop.xlane.xlu1 %1853  ;;  %v2106_v62 = vsel %vm2105_vm14, %v2842_v39, %v2102_v57  ;;  %v2109_v49 = vmul.f32 %v2844_v30, %v2108_v10 }
 0x2c6   : > { %v1900_v53 = vmul.f32 %v1854_v5, %v3704_v25  ;;  %v2282_v26 = vmul.f32 %v2106_v62, %v3855_v2 }
 0x2c7   : > { %v2110_v50 = vmul.f32 0.5, %v2109_v49  ;;  %v1856_v54 = vpop.xlane.xlu2 %1855 }
 0x2c8   : > { %v2846_v12 = vpop.eup %2845  ;;  %v1932_v34 = vadd.f32 1e-05, %v1900_v53  ;;  %v2315_v24 = vmul.f32 %v3887_v37, %v2282_v26  ;;  %v1901_v32 = vmul.f32 %v1856_v54, %v3704_v25 }
 0x2c9   : > { %v2088_v45 = vmul.f32 %v2846_v12, %v1929_v27  ;;  %v2111_v61 = vsub.f32 1.5, %v2110_v50  ;;  %vm2094_vm3 = vweird.f32 %v2846_v12 }
 0x2ca   : > { %2847 = vrsqrt.f32 %v1932_v34  ;;  %v2348_v6 = vadd.f32 %v3889_v56, %v2315_v24  ;;  %v1933_v15 = vadd.f32 1e-05, %v1901_v32  ;;  %vm2095_vm5 = vmor %vm2093_vm4, %vm2094_vm3  ;;  %vm2123_vm7 = vweird.f32 %v1932_v34 }
 0x2cb   : > { %v2089_v1 = vmul.f32 %v2846_v12, %v2088_v45  ;;  %v2112_v11 = vmul.f32 %v2844_v30, %v2111_v61 }
 0x2cc   : > { %2380 = vst [vmem:[%s3905_s8 + $0x78] sm:$0xff] %v2348_v6  ;;  %2849 = vrsqrt.f32 %v1933_v15  ;;  %vm2133_vm0 = vweird.f32 %v1933_v15 }
 0x2cd   : > { %v2090_v2 = vmul.f32 0.5, %v2089_v1  ;;  %v2116_v42 = vsel %vm2115_vm2, %v2844_v30, %v2112_v11 }
 0x2ce   : > { %v2283_v4 = vmul.f32 %v2116_v42, %v3867_v16 }
 0x2cf   : > { %v2091_v31 = vsub.f32 1.5, %v2090_v2  ;;  %v1858_v35 = vpop.xlane.xlu0 %1857 }
 0x2d0   : > { %v2848_v43 = vpop.eup %2847  ;;  %v2316_v9 = vmul.f32 %v3887_v37, %v2283_v4  ;;  %v1902_v21 = vmul.f32 %v1858_v35, %v3704_v25 }
 0x2d1   : > { %v2092_v52 = vmul.f32 %v2846_v12, %v2091_v31  ;;  %v2118_v63 = vmul.f32 %v2848_v43, %v1932_v34  ;;  %vm2124_vm6 = vweird.f32 %v2848_v43 }
 0x2d2   : > { %v2850_v55 = vpop.eup %2849  ;;  %v2349_v13 = vadd.f32 %v3889_v56, %v2316_v9  ;;  %v1934_v0 = vadd.f32 1e-05, %v1902_v21  ;;  %vm2125_vm8 = vmor %vm2123_vm7, %vm2124_vm6 }
 0x2d3   : > { %v2096_v47 = vsel %vm2095_vm5, %v2846_v12, %v2092_v52  ;;  %v2119_v20 = vmul.f32 %v2848_v43, %v2118_v63  ;;  %v2128_v39 = vmul.f32 %v2850_v55, %v1933_v15  ;;  %vm2134_vm9 = vweird.f32 %v2850_v55 }
 0x2d4   : > { %v2281_v16 = vmul.f32 %v2096_v47, %v3874_v48  ;;  %2381 = vst [vmem:[%s3905_s8 + $0x80] sm:$0xff] %v2349_v13  ;;  %2851 = vrsqrt.f32 %v1934_v0  ;;  %vm2135_vm10 = vmor %vm2133_vm0, %vm2134_vm9  ;;  %vm2143_vm12 = vweird.f32 %v1934_v0 }
 0x2d5   : > { %v2120_v51 = vmul.f32 0.5, %v2119_v20  ;;  %v2129_v7 = vmul.f32 %v2850_v55, %v2128_v39 }
 0x2d6   : > { %v2314_v38 = vmul.f32 %v3887_v37, %v2281_v16 }
 0x2d7   : > { %v2121_v46 = vsub.f32 1.5, %v2120_v51  ;;  %v2130_v40 = vmul.f32 0.5, %v2129_v7  ;;  %v1860_v27 = vpop.xlane.xlu1 %1859 }
 0x2d8   : > { %v2347_v59 = vadd.f32 %v3889_v56, %v2314_v38  ;;  %v1903_v30 = vmul.f32 %v1860_v27, %v3704_v25 }
 0x2d9   : > { %v2122_v33 = vmul.f32 %v2848_v43, %v2121_v46  ;;  %v2131_v48 = vsub.f32 1.5, %v2130_v40 }
 0x2da   : > { %2379 = vst [vmem:[%s3905_s8 + $0x70] sm:$0xff] %v2347_v59  ;;  %v1935_v10 = vadd.f32 1e-05, %v1903_v30  ;;  %v2852_v5 = vpop.eup %2851 }
 0x2db   : > { %v2126_v57 = vsel %vm2125_vm8, %v2848_v43, %v2122_v33  ;;  %v2132_v49 = vmul.f32 %v2850_v55, %v2131_v48  ;;  %v2138_v53 = vmul.f32 %v2852_v5, %v1934_v0  ;;  %vm2144_vm11 = vweird.f32 %v2852_v5 }
 0x2dc   : > { %v2284_v62 = vmul.f32 %v2126_v57, %v3882_v8  ;;  %2853 = vrsqrt.f32 %v1935_v10  ;;  %vm2145_vm13 = vmor %vm2143_vm12, %vm2144_vm11  ;;  %vm2153_vm15 = vweird.f32 %v1935_v10 }
 0x2dd   : > { %v2136_v12 = vsel %vm2135_vm10, %v2850_v55, %v2132_v49  ;;  %v2139_v34 = vmul.f32 %v2852_v5, %v2138_v53 }
 0x2de   : > { %v2317_v26 = vmul.f32 %v3887_v37, %v2284_v62  ;;  %v2285_v50 = vmul.f32 %v2136_v12, %v3899_v41 }
 0x2df   : > { %v1862_v24 = vpop.xlane.xlu2 %1861  ;;  %v2140_v32 = vmul.f32 0.5, %v2139_v34 }
 0x2e0   : > { %v2350_v54 = vadd.f32 %v3889_v56, %v2317_v26  ;;  %v2318_v45 = vmul.f32 %v3887_v37, %v2285_v50  ;;  %v1904_v8 = vmul.f32 %v1862_v24, %v3704_v25 }
 0x2e1   : > { %v2141_v1 = vsub.f32 1.5, %v2140_v32 }
 0x2e2   : > { %2382 = vst [vmem:[%s3905_s8 + $0x88] sm:$0xff] %v2350_v54  ;;  %v2854_v61 = vpop.eup %2853  ;;  %v2351_v6 = vadd.f32 %v3889_v56, %v2318_v45  ;;  %v1936_v15 = vadd.f32 1e-05, %v1904_v8 }
 0x2e3   : > { %v2148_v11 = vmul.f32 %v2854_v61, %v1935_v10  ;;  %v2142_v2 = vmul.f32 %v2852_v5, %v2141_v1  ;;  %vm2154_vm14 = vweird.f32 %v2854_v61 }
 0x2e4   : > { %2383 = vst [vmem:[%s3905_s8 + $0x90] sm:$0xff] %v2351_v6  ;;  %2855 = vrsqrt.f32 %v1936_v15  ;;  %vm2155_vm1 = vmor %vm2153_vm15, %vm2154_vm14  ;;  %vm2163_vm3 = vweird.f32 %v1936_v15 }
 0x2e5   : > { %v2149_v41 = vmul.f32 %v2854_v61, %v2148_v11  ;;  %v2146_v42 = vsel %vm2145_vm13, %v2852_v5, %v2142_v2 }
 0x2e6   : > { %v2286_v4 = vmul.f32 %v2146_v42, %v3912_v19 }
 0x2e7   : > { %v2150_v31 = vmul.f32 0.5, %v2149_v41  ;;  %v1864_v43 = vpop.xlane.xlu0 %1863 }
 0x2e8   : > { %v1905_v35 = vmul.f32 %v1864_v43, %v3704_v25  ;;  %v2319_v9 = vmul.f32 %v3887_v37, %v2286_v4 }
 0x2e9   : > { %v2151_v52 = vsub.f32 1.5, %v2150_v31 }
 0x2ea   : > { %v2856_v63 = vpop.eup %2855  ;;  %v1937_v21 = vadd.f32 1e-05, %v1905_v35  ;;  %v2352_v55 = vadd.f32 %v3889_v56, %v2319_v9 }
 0x2eb   : > { %v2152_v13 = vmul.f32 %v2854_v61, %v2151_v52  ;;  %v2158_v47 = vmul.f32 %v2856_v63, %v1936_v15  ;;  %vm2164_vm2 = vweird.f32 %v2856_v63 }
 0x2ec   : > { %2857 = vrsqrt.f32 %v1937_v21  ;;  %2384 = vst [vmem:[%s3905_s8 + $0x98] sm:$0xff] %v2352_v55  ;;  %vm2165_vm4 = vmor %vm2163_vm3, %vm2164_vm2  ;;  %vm2173_vm6 = vweird.f32 %v1937_v21 }
 0x2ed   : > { %v2156_v20 = vsel %vm2155_vm1, %v2854_v61, %v2152_v13  ;;  %v2159_v19 = vmul.f32 %v2856_v63, %v2158_v47 }
 0x2ee   : > { %v2287_v16 = vmul.f32 %v2156_v20, %v3923_v17 }
 0x2ef   : > { %v1866_v39 = vpop.xlane.xlu1 %1865  ;;  %v2160_v0 = vmul.f32 0.5, %v2159_v19 }
 0x2f0   : > { %v1906_v51 = vmul.f32 %v1866_v39, %v3704_v25  ;;  %v2320_v38 = vmul.f32 %v3887_v37, %v2287_v16 }
 0x2f1   : > { %v2161_v7 = vsub.f32 1.5, %v2160_v0 }
 0x2f2   : > { %v1938_v46 = vadd.f32 1e-05, %v1906_v51  ;;  %v2858_v59 = vpop.eup %2857  ;;  %v2353_v40 = vadd.f32 %v3889_v56, %v2320_v38 }
 0x2f3   : > { %v2162_v27 = vmul.f32 %v2856_v63, %v2161_v7  ;;  %v2168_v33 = vmul.f32 %v2858_v59, %v1937_v21  ;;  %vm2174_vm5 = vweird.f32 %v2858_v59 }
 0x2f4   : > { %2859 = vrsqrt.f32 %v1938_v46  ;;  %2385 = vst [vmem:[%s3905_s8 + $0xa0] sm:$0xff] %v2353_v40  ;;  %vm2175_vm7 = vmor %vm2173_vm6, %vm2174_vm5  ;;  %vm2183_vm9 = vweird.f32 %v1938_v46 }
 0x2f5   : > { %v2166_v30 = vsel %vm2165_vm4, %v2856_v63, %v2162_v27  ;;  %v2169_v17 = vmul.f32 %v2858_v59, %v2168_v33 }
 0x2f6   : > { %v2288_v48 = vmul.f32 %v2166_v30, %v3934_v60 }
 0x2f7   : > { %v1868_v57 = vpop.xlane.xlu2 %1867  ;;  %v2170_v10 = vmul.f32 0.5, %v2169_v17 }
 0x2f8   : > { %v1907_v5 = vmul.f32 %v1868_v57, %v3704_v25  ;;  %v2321_v62 = vmul.f32 %v3887_v37, %v2288_v48 }
 0x2f9   : > { %v2171_v53 = vsub.f32 1.5, %v2170_v10 }
 0x2fa   : > { %v2860_v49 = vpop.eup %2859  ;;  %v1939_v26 = vadd.f32 1e-05, %v1907_v5  ;;  %v2354_v12 = vadd.f32 %v3889_v56, %v2321_v62 }
 0x2fb   : > { %v2178_v50 = vmul.f32 %v2860_v49, %v1938_v46  ;;  %v2172_v34 = vmul.f32 %v2858_v59, %v2171_v53  ;;  %vm2184_vm8 = vweird.f32 %v2860_v49 }
 0x2fc   : > { %2861 = vrsqrt.f32 %v1939_v26  ;;  %2386 = vst [vmem:[%s3905_s8 + $0xa8] sm:$0xff] %v2354_v12  ;;  %vm2185_vm0 = vmor %vm2183_vm9, %vm2184_vm8  ;;  %vm2193_vm11 = vweird.f32 %v1939_v26 }
 0x2fd   : > { %v2179_v54 = vmul.f32 %v2860_v49, %v2178_v50  ;;  %v2176_v60 = vsel %vm2175_vm7, %v2858_v59, %v2172_v34 }
 0x2fe   : > { %v2289_v24 = vmul.f32 %v2176_v60, %v3944_v29 }
 0x2ff   : > { %v2180_v45 = vmul.f32 0.5, %v2179_v54  ;;  %v1870_v32 = vpop.xlane.xlu0 %1869 }
 0x300   : > { %v1908_v8 = vmul.f32 %v1870_v32, %v3704_v25  ;;  %v2322_v61 = vmul.f32 %v3887_v37, %v2289_v24 }
 0x301   : > { %v2181_v6 = vsub.f32 1.5, %v2180_v45 }
 0x302   : > { %v2862_v1 = vpop.eup %2861  ;;  %v1940_v15 = vadd.f32 1e-05, %v1908_v8  ;;  %v2355_v11 = vadd.f32 %v3889_v56, %v2322_v61 }
 0x303   : > { %v2182_v2 = vmul.f32 %v2860_v49, %v2181_v6  ;;  %v2188_v41 = vmul.f32 %v2862_v1, %v1939_v26  ;;  %vm2194_vm10 = vweird.f32 %v2862_v1 }
 0x304   : > { %2863 = vrsqrt.f32 %v1940_v15  ;;  %2387 = vst [vmem:[%s3905_s8 + $0xb0] sm:$0xff] %v2355_v11  ;;  %vm2195_vm12 = vmor %vm2193_vm11, %vm2194_vm10  ;;  %vm2203_vm14 = vweird.f32 %v1940_v15 }
 0x305   : > { %v2186_v29 = vsel %vm2185_vm0, %v2860_v49, %v2182_v2  ;;  %v2189_v42 = vmul.f32 %v2862_v1, %v2188_v41 }
 0x306   : > { %v2290_v4 = vmul.f32 %v2186_v29, %v3955_v44 }
 0x307   : > { %v2190_v31 = vmul.f32 0.5, %v2189_v42  ;;  %v1872_v43 = vpop.xlane.xlu1 %1871 }
 0x308   : > { %v2323_v35 = vmul.f32 %v3887_v37, %v2290_v4  ;;  %v1909_v9 = vmul.f32 %v1872_v43, %v3704_v25 }
 0x309   : > { %v2191_v52 = vsub.f32 1.5, %v2190_v31 }
 0x30a   : > { %v2864_v63 = vpop.eup %2863  ;;  %v2356_v21 = vadd.f32 %v3889_v56, %v2323_v35  ;;  %v1941_v55 = vadd.f32 1e-05, %v1909_v9 }
 0x30b   : > { %v2192_v13 = vmul.f32 %v2862_v1, %v2191_v52  ;;  %v2198_v47 = vmul.f32 %v2864_v63, %v1940_v15  ;;  %vm2204_vm13 = vweird.f32 %v2864_v63 }
 0x30c   : > { %2388 = vst [vmem:[%s3905_s8 + $0xb8] sm:$0xff] %v2356_v21  ;;  %2865 = vrsqrt.f32 %v1941_v55  ;;  %vm2205_vm15 = vmor %vm2203_vm14, %vm2204_vm13  ;;  %vm2213_vm2 = vweird.f32 %v1941_v55 }
 0x30d   : > { %v2196_v44 = vsel %vm2195_vm12, %v2862_v1, %v2192_v13  ;;  %v2199_v20 = vmul.f32 %v2864_v63, %v2198_v47 }
 0x30e   : > { %v2291_v19 = vmul.f32 %v2196_v44, %v3966_v28 }
 0x30f   : > { %v2200_v16 = vmul.f32 0.5, %v2199_v20  ;;  %v1874_v39 = vpop.xlane.xlu2 %1873 }
 0x310   : > { %v2324_v0 = vmul.f32 %v3887_v37, %v2291_v19  ;;  %v1910_v51 = vmul.f32 %v1874_v39, %v3704_v25 }
 0x311   : > { %v2201_v38 = vsub.f32 1.5, %v2200_v16 }
 0x312   : > { %v2866_v7 = vpop.eup %2865  ;;  %v2357_v46 = vadd.f32 %v3889_v56, %v2324_v0  ;;  %v1942_v59 = vadd.f32 1e-05, %v1910_v51 }
 0x313   : > { %v2202_v40 = vmul.f32 %v2864_v63, %v2201_v38  ;;  %v2208_v27 = vmul.f32 %v2866_v7, %v1941_v55  ;;  %vm2214_vm1 = vweird.f32 %v2866_v7 }
 0x314   : > { %2389 = vst [vmem:[%s3905_s8 + $0xc0] sm:$0xff] %v2357_v46  ;;  %2867 = vrsqrt.f32 %v1942_v59  ;;  %vm2215_vm3 = vmor %vm2213_vm2, %vm2214_vm1  ;;  %vm2223_vm5 = vweird.f32 %v1942_v59 }
 0x315   : > { %v2206_v28 = vsel %vm2205_vm15, %v2864_v63, %v2202_v40  ;;  %v2209_v33 = vmul.f32 %v2866_v7, %v2208_v27 }
 0x316   : > { %v2292_v30 = vmul.f32 %v2206_v28, %v3977_v18 }
 0x317   : > { %v2210_v17 = vmul.f32 0.5, %v2209_v33  ;;  %v1876_v48 = vpop.xlane.xlu0 %1875 }
 0x318   : > { %v2325_v57 = vmul.f32 %v3887_v37, %v2292_v30  ;;  %v1911_v10 = vmul.f32 %v1876_v48, %v3704_v25 }
 0x319   : > { %v2211_v5 = vsub.f32 1.5, %v2210_v17 }
 0x31a   : > { %v2868_v62 = vpop.eup %2867  ;;  %v2358_v49 = vadd.f32 %v3889_v56, %v2325_v57  ;;  %v1943_v53 = vadd.f32 1e-05, %v1911_v10 }
 0x31b   : > { %v2212_v26 = vmul.f32 %v2866_v7, %v2211_v5  ;;  %v2218_v12 = vmul.f32 %v2868_v62, %v1942_v59  ;;  %vm2224_vm4 = vweird.f32 %v2868_v62 }
 0x31c   : > { %2390 = vst [vmem:[%s3905_s8 + $0xc8] sm:$0xff] %v2358_v49  ;;  %2869 = vrsqrt.f32 %v1943_v53  ;;  %vm2225_vm6 = vmor %vm2223_vm5, %vm2224_vm4  ;;  %vm2233_vm8 = vweird.f32 %v1943_v53 }
 0x31d   : > { %v2216_v18 = vsel %vm2215_vm3, %v2866_v7, %v2212_v26  ;;  %v2219_v50 = vmul.f32 %v2868_v62, %v2218_v12 }
 0x31e   : > { %v2293_v34 = vmul.f32 %v2216_v18, %v3988_v14 }
 0x31f   : > { %v2220_v54 = vmul.f32 0.5, %v2219_v50  ;;  %v1878_v60 = vpop.xlane.xlu1 %1877 }
 0x320   : > { %v2326_v24 = vmul.f32 %v3887_v37, %v2293_v34  ;;  %v1912_v45 = vmul.f32 %v1878_v60, %v3704_v25 }
 0x321   : > { %v2221_v32 = vsub.f32 1.5, %v2220_v54 }
 0x322   : > { %v2870_v8 = vpop.eup %2869  ;;  %v2359_v61 = vadd.f32 %v3889_v56, %v2326_v24  ;;  %v1944_v6 = vadd.f32 1e-05, %v1912_v45 }
 0x323   : > { %v2222_v1 = vmul.f32 %v2868_v62, %v2221_v32  ;;  %v2228_v15 = vmul.f32 %v2870_v8, %v1943_v53  ;;  %vm2234_vm7 = vweird.f32 %v2870_v8 }
 0x324   : > { %2391 = vst [vmem:[%s3905_s8 + $0xd0] sm:$0xff] %v2359_v61  ;;  %2871 = vrsqrt.f32 %v1944_v6  ;;  %vm2235_vm9 = vmor %vm2233_vm8, %vm2234_vm7  ;;  %vm2243_vm10 = vweird.f32 %v1944_v6 }
 0x325   : > { %v2226_v14 = vsel %vm2225_vm6, %v2868_v62, %v2222_v1  ;;  %v2229_v11 = vmul.f32 %v2870_v8, %v2228_v15 }
 0x326   : > { %v2294_v2 = vmul.f32 %v2226_v14, %v3999_v22 }
 0x327   : > { %v2230_v41 = vmul.f32 0.5, %v2229_v11  ;;  %v1880_v29 = vpop.xlane.xlu2 %1879 }
 0x328   : > { %v2327_v42 = vmul.f32 %v3887_v37, %v2294_v2  ;;  %v1913_v4 = vmul.f32 %v1880_v29, %v3704_v25 }
 0x329   : > { %v2231_v31 = vsub.f32 1.5, %v2230_v41 }
 0x32a   : > { %v2872_v43 = vpop.eup %2871  ;;  %v2360_v35 = vadd.f32 %v3889_v56, %v2327_v42  ;;  %v1945_v9 = vadd.f32 1e-05, %v1913_v4 }
 0x32b   : > { %v2232_v52 = vmul.f32 %v2870_v8, %v2231_v31  ;;  %v2238_v63 = vmul.f32 %v2872_v43, %v1944_v6  ;;  %vm2244_vm0 = vweird.f32 %v2872_v43 }
 0x32c   : > { %2392 = vst [vmem:[%s3905_s8 + $0xd8] sm:$0xff] %v2360_v35  ;;  %2873 = vrsqrt.f32 %v1945_v9  ;;  %vm2245_vm11 = vmor %vm2243_vm10, %vm2244_vm0  ;;  %vm2253_vm13 = vweird.f32 %v1945_v9 }
 0x32d   : > { %v2236_v22 = vsel %vm2235_vm9, %v2870_v8, %v2232_v52  ;;  %v2239_v21 = vmul.f32 %v2872_v43, %v2238_v63 }
 0x32e   : > { %v2295_v55 = vmul.f32 %v2236_v22, %v4010_v23 }
 0x32f   : > { %v2240_v13 = vmul.f32 0.5, %v2239_v21  ;;  %v1882_v47 = vpop.xlane.xlu0 %1881 }
 0x330   : > { %v2328_v44 = vmul.f32 %v3887_v37, %v2295_v55  ;;  %v1914_v20 = vmul.f32 %v1882_v47, %v3704_v25 }
 0x331   : > { %v2241_v19 = vsub.f32 1.5, %v2240_v13 }
 0x332   : > { %v2874_v16 = vpop.eup %2873  ;;  %v2361_v39 = vadd.f32 %v3889_v56, %v2328_v44  ;;  %v1946_v0 = vadd.f32 1e-05, %v1914_v20 }
 0x333   : > { %v2242_v51 = vmul.f32 %v2872_v43, %v2241_v19  ;;  %v2248_v38 = vmul.f32 %v2874_v16, %v1945_v9  ;;  %vm2254_vm12 = vweird.f32 %v2874_v16 }
 0x334   : > { %2393 = vst [vmem:[%s3905_s8 + $0xe0] sm:$0xff] %v2361_v39  ;;  %2875 = vrsqrt.f32 %v1946_v0  ;;  %vm2255_vm14 = vmor %vm2253_vm13, %vm2254_vm12  ;;  %vm2263_vm1 = vweird.f32 %v1946_v0 }
 0x335   : > { %v2246_v23 = vsel %vm2245_vm11, %v2872_v43, %v2242_v51  ;;  %v2249_v7 = vmul.f32 %v2874_v16, %v2248_v38 }
 0x336   : > { %v2296_v46 = vmul.f32 %v2246_v23, %v4021_v3 }
 0x337   : > { %v2250_v59 = vmul.f32 0.5, %v2249_v7 }
 0x338   : > { %v2329_v25 = vmul.f32 %v3887_v37, %v2296_v46 }
 0x339   : > { %v2251_v40 = vsub.f32 1.5, %v2250_v59 }
 0x33a   : > { %v2876_v27 = vpop.eup %2875  ;;  %v2362_v28 = vadd.f32 %v3889_v56, %v2329_v25 }
 0x33b   : > { %v2252_v33 = vmul.f32 %v2874_v16, %v2251_v40  ;;  %v2258_v30 = vmul.f32 %v2876_v27, %v1946_v0  ;;  %vm2264_vm15 = vweird.f32 %v2876_v27 }
 0x33c   : > { %2394 = vst [vmem:[%s3905_s8 + $0xe8] sm:$0xff] %v2362_v28  ;;  %vm2265_vm2 = vmor %vm2263_vm1, %vm2264_vm15 }
 0x33d   : > { %v2256_v17 = vsel %vm2255_vm14, %v2874_v16, %v2252_v33  ;;  %v2259_v48 = vmul.f32 %v2876_v27, %v2258_v30 }
 0x33e   : > { %v2297_v3 = vmul.f32 %v2256_v17, %v4031_v58 }
 0x33f   : > { %v2260_v57 = vmul.f32 0.5, %v2259_v48 }
 0x340   : > { %v2330_v10 = vmul.f32 %v3887_v37, %v2297_v3 }
 0x341   : > { %v2261_v5 = vsub.f32 1.5, %v2260_v57 }
 0x342   : > { %v2363_v62 = vadd.f32 %v3889_v56, %v2330_v10 }
 0x343   : > { %v2262_v49 = vmul.f32 %v2876_v27, %v2261_v5 }
 0x344   : > { %2395 = vst [vmem:[%s3905_s8 + $0xf0] sm:$0xff] %v2363_v62 }
 0x345   : > { %v2266_v53 = vsel %vm2265_vm2, %v2876_v27, %v2262_v49 }
 0x346   : > { %v2298_v26 = vmul.f32 %v2266_v53, %v4042_v36 }
 0x348   : > { %v2331_v12 = vmul.f32 %v3887_v37, %v2298_v26  ;;  %2404 = sbr.rel (!%p3036_p5) target bundleno = 877 (0x36d), region = 52 }
 0x34a   : > { %v2364_v18 = vadd.f32 %v3889_v56, %v2331_v12 }
 0x34c   : > { %2396 = vst [vmem:[%s3905_s8 + $0xf8] sm:$0xff] %v2364_v18 }
 0x34d   : > { %s4223_s14 = smov (!%p2407_p11, %s2406_s14), 32 }
 0x34e   : > { %s2601_s15 = sshll.u32 %s4223_s14, 3 }
 0x34f   : > { %s2410_s22 = ssub.s32 256, %s2601_s15 }
 0x350   : > { %s2411_s20 = sshll.u32 %s2410_s22, 4 }
 0x351   : > { %2412 = vsyncadd %s4140_s13, %s2411_s20  ;;  %p4149_p12 = scmp.ne.s32.totalorder %s2601_s15, 0  ;;  %s2608_s11 = sshll.u32 %s3019_s28, 8 }
 0x352   : > { %s2415_s17 = scalar_lea.hbm %s4208_s7, %s2608_s11  ;;  %s2417_s9 = sshll.u32 %s3905_s8, 4  ;;  %s4158_s9 = int_to_ptr.vmem [resolvable:$true] %s2417_s9 }
 0x353   : > { %s2419_s18 = sshll.u32 %s2415_s17, 4  ;;  %s4209_s21 = sshll.u32 %s4223_s14, 7  ;;  %s4160_s18 = int_to_ptr.hbm [resolvable:$true] %s2419_s18 }
 0x354   : > { %s2879_s23 = sshra.s32 %s4158_s9, 4  ;;  %s2881_s15 = sshrl.u32 %s4209_s21, 4  ;;  %s2880_s23 = int_to_ptr.vmem [resolvable:$true] %s2879_s23 }
 0x355   : > { %s2886_s22 = scalar_lea.vmem %s2880_s23, %s2881_s15  ;;  %s2955_s28 = smov [#allocation2]  }
 0x356   : > { %p2887_p13 = scmp.ne.s32.totalorder %s2880_s23, %s2886_s22  ;;  %s2890_s20 = scalar_lea.vmem %s2955_s28, 512 }
 0x357   : > { %p2892_p2 = scmp.lt.s32.totalorder %s2890_s20, %s2886_s22 }
 0x358   : > { %p2888_p0 = pnand %p2887_p13, %p4149_p12 }
 0x35a   : > { %p2889_p1 = pneg %p2888_p0 }
 0x35c   : > { %p2894_p3 = pnand %p2892_p2, %p2889_p1 }
 0x35e   : > { %2897 = shalt.err (!%p2894_p3)
}
 0x35f   : > { %s2898_s8 = sshra.s32 %s4160_s18, 4  ;;  %s2909_s17 = scalar_lea.hbm %s4208_s7, 504  ;;  %s2899_s8 = int_to_ptr.hbm [resolvable:$true] %s2898_s8 }
 0x360   : > { %s2905_s11 = scalar_lea.hbm %s2899_s8, %s2881_s15  ;;  %p2910_p8 = scmp.lt.s32.totalorder %s2899_s8, %s4208_s7 }
 0x361   : > { %p2906_p4 = scmp.ne.s32.totalorder %s2899_s8, %s2905_s11  ;;  %p2911_p9 = scmp.lt.s32.totalorder %s2909_s17, %s2905_s11 }
 0x363   : > { %p2907_p5 = pnand %p2906_p4, %p4149_p12  ;;  %p2912_p10 = por %p2911_p9, %p2910_p8 }
 0x365   : > { %p2908_p7 = pneg %p2907_p5 }
 0x367   : > { %p2913_p11 = pnand %p2912_p10, %p2908_p7 }
 0x369   : > { %2916 = shalt.err (!%p2913_p11)
}
 0x36a   : > { %s2956_s22 = smov 128   ;;  %s2957_s15 = smov 8  }
 0x36b   : > { %s4217_s28 = sshll.u32 %s4223_s14, 7 }
 0x36c   : > { %2425 = dma.vmem_to_hbm [thread:$0]  (%p4149_p12), %s4158_s9, %s4217_s28, %s4160_s18, %s4140_s13, %s2956_s22, %s2956_s22, %s2957_s15  }
 0x36d PF: > { %p2646_p13 = scmp.ge.s32.totalorder %s2952_s27, 2  ;;  %s2434_s21 = sand.u32 1, %s2940_s24  }
 0x36e   : > { %s2435_s20 = scalar_lea.sflag [#allocation3], %s2434_s21 }
 0x36f   : > { %p2643_p0 = pnand %p2646_p13, %p3040_p6 }
 0x371   : > { %p2644_p1 = pneg %p2643_p0 }
 0x373   : > { %2935 = dma.done.wait (%p2644_p1), %s2435_s20, 4096  }
 0x374   : > { %2937 = vsyncadd (%p2644_p1), %s2435_s20, 4294963200  ;;  %p17_p2 = scmp.ge.s32.totalorder %s3023_s30, 4   ;;  %s4218_s24 = smov %s2944_s25 }
 0x375   : > { %s4219_s25 = smov %s2948_s26  ;;  %s4220_s26 = smov %s3034_s10 }
 0x376   : > { %s4221_s27 = smov %s3023_s30  ;;  %19 = sbr.rel (!%p17_p2) target bundleno = 3 (0x3), region = 86 }
 0x37b   :  { %2441 = vsyncpa [#allocation3], 1 }
 0x37c   :  { %2443 = vsyncpa [#allocation3 + $0x1], 1 }

</bundles_post_ra>
